<compile_context>
chip_gen: v7x
topology: tpu7x:2x2x1
jax: 0.10.0
libtpu: 0.0.40
codegen_flags: <defaults>
</compile_context>

<pallas_src>
import jax
import jax.numpy as jnp
from jax import lax
from jax.experimental import pallas as pl
from jax.experimental.pallas import tpu as pltpu


def mlp_kernel(x_ref,
               w1_ref, b1_ref,
               w2_ref, b2_ref,
               w3_ref, b3_ref,
               w4_ref, b4_ref,
               o_ref):
    # Cast x to bf16 after the DMA (x is DMA'd as f32; no wrapper-side cast).
    x = x_ref[...].astype(jnp.bfloat16)

    # Layer 1: folded Linear+BN -> ReLU  (Dropout(0.1) is identity in eval mode)
    h = jnp.dot(x, w1_ref[...], preferred_element_type=jnp.float32) + b1_ref[...]
    h = jnp.maximum(h, 0.0).astype(jnp.bfloat16)
    # Layer 2: folded Linear+BN -> ReLU  (Dropout(0.1) is identity in eval mode)
    h = jnp.dot(h, w2_ref[...], preferred_element_type=jnp.float32) + b2_ref[...]
    h = jnp.maximum(h, 0.0).astype(jnp.bfloat16)
    # Layer 3: folded Linear+BN -> ReLU
    h = jnp.dot(h, w3_ref[...], preferred_element_type=jnp.float32) + b3_ref[...]
    h = jnp.maximum(h, 0.0).astype(jnp.bfloat16)

    # Output head Linear(256, 1), lane-packed: contract (1,H3) with (tile_b,H3)
    # along H3 -> (1, tile_b).  The batch dim lands on the lane axis, so the
    # HBM store is dense (no 128-lane zero padding, no masked vst).
    head = lax.dot_general(
        w4_ref[...], h,
        dimension_numbers=(((1,), (1,)), ((), ())),
        preferred_element_type=jnp.float32)
    o_ref[...] = head + b4_ref[...]


def _fold_bn_into_linear(w, b, scale, shift):
    """Fold eval-mode BatchNorm1d (y = h*scale + shift) into the preceding Linear."""
    w_f = (w.astype(jnp.float32) * scale).astype(jnp.bfloat16)   # column-wise scale
    b_f = (b * scale + shift).astype(jnp.float32)                # epilogue stays f32
    return w_f, b_f


def prepare_params(params):
    """One-time static prep: fold BN affines, cast matmul weights to bf16,
    transpose the 1-wide head to (1, 256) for the lane-packed head dot."""
    w1, b1 = _fold_bn_into_linear(params["w1"], params["b1"], params["s1"], params["t1"])
    w2, b2 = _fold_bn_into_linear(params["w2"], params["b2"], params["s2"], params["t2"])
    w3, b3 = _fold_bn_into_linear(params["w3"], params["b3"], params["s3"], params["t3"])
    w4 = params["w4"].T.astype(jnp.bfloat16)      # (1, 256)
    b4 = params["b4"].astype(jnp.float32)          # (1, 1)
    return dict(w1=w1, b1=b1, w2=w2, b2=b2, w3=w3, b3=b3, w4=w4, b4=b4)


def _pick_tile_b(B, max_tile_b):
    """Batch tile: multiples of 256, as large as max_tile_b, but keep >= 2 grid
    steps whenever the batch allows (v7x shards the parallel axis over 2 TCs)."""
    pad_min = pl.cdiv(B, 256) * 256
    if pad_min <= 256:
        return 256
    half = (pad_min // 2 // 256) * 256
    return min(max_tile_b, max(256, half))


def mlp_forward(x, prepared, *, tile_b=None, max_tile_b=1024):
    """x: (B, D) float32.  prepared: output of prepare_params().  Returns (B, 1) f32."""
    B, D = x.shape
    if tile_b is None:
        tile_b = _pick_tile_b(B, max_tile_b)
    pad_b = pl.cdiv(B, tile_b) * tile_b

    if pad_b != B:
        x = jnp.pad(x, ((0, pad_b - B), (0, 0)))   # zero-pad batch; rows sliced off below

    w1, b1 = prepared["w1"], prepared["b1"]
    w2, b2 = prepared["w2"], prepared["b2"]
    w3, b3 = prepared["w3"], prepared["b3"]
    w4, b4 = prepared["w4"], prepared["b4"]
    H1, H2, H3 = w1.shape[1], w2.shape[1], w3.shape[1]

    def whole(shape):
        # Whole-array block with a constant block index across the batch grid
        # axis: Pallas keeps it VMEM-resident and never re-fetches it.
        return pl.BlockSpec(shape, lambda i: (0,) * len(shape))

    grid = (pad_b // tile_b,)
    flops = 2 * pad_b * (D * H1 + H1 * H2 + H2 * H3 + H3 * 1)
    bytes_accessed = (
        pad_b * D * 4                                               # x (f32)
        + sum(int(p.size) * p.dtype.itemsize for p in prepared.values())
        + pad_b * 4                                                 # lane-packed f32 head
    )

    out = pl.pallas_call(
        mlp_kernel,
        grid=grid,
        in_specs=[
            pl.BlockSpec((tile_b, D), lambda i: (i, 0)),            # x tile over batch
            whole((D, H1)), whole((1, H1)),
            whole((H1, H2)), whole((1, H2)),
            whole((H2, H3)), whole((1, H3)),
            whole((1, H3)), whole((1, 1)),
        ],
        # Lane-packed head: (1, pad_b) f32, each grid step writes its (1, tile_b)
        # lane slice -> dense stores, ~128x less output HBM traffic than padding.
        out_specs=pl.BlockSpec((1, tile_b), lambda i: (0, i)),
        out_shape=jax.ShapeDtypeStruct((1, pad_b), jnp.float32),
        compiler_params=pltpu.CompilerParams(
            dimension_semantics=("parallel",),
            vmem_limit_bytes=32 * 1024 * 1024,
        ),
        cost_estimate=pl.CostEstimate(
            flops=flops, transcendentals=0, bytes_accessed=bytes_accessed),
    )(x, w1, b1, w2, b2, w3, b3, w4, b4)

    return out[0, :B].reshape(B, 1)


def init_params(key, input_dim):
    """Deterministic synthetic parameters matching the PyTorch module's shapes."""
    dims = [(input_dim, 512), (512, 256), (256, 256), (256, 1)]
    params = {}
    keys = jax.random.split(key, 32)
    k = 0
    eps = 1e-5
    for li, (din, dout) in enumerate(dims, start=1):
        w = jax.random.normal(keys[k], (din, dout), jnp.float32) * 0.05; k += 1
        b = jax.random.normal(keys[k], (1, dout), jnp.float32) * 0.05; k += 1
        params[f"w{li}"] = w
        params[f"b{li}"] = b
        if li <= 3:  # BatchNorm1d follows the first three Linear layers
            gamma = 1.0 + 0.1 * jax.random.normal(keys[k], (1, dout), jnp.float32); k += 1
            beta = 0.1 * jax.random.normal(keys[k], (1, dout), jnp.float32); k += 1
            r_mean = 0.1 * jax.random.normal(keys[k], (1, dout), jnp.float32); k += 1
            r_var = 0.5 + jnp.abs(jax.random.normal(keys[k], (1, dout), jnp.float32)); k += 1
            scale = gamma / jnp.sqrt(r_var + eps)
            shift = beta - r_mean * scale
            params[f"s{li}"] = scale
            params[f"t{li}"] = shift
    return params


def mlp_reference(x, params):
    """Pure-JAX f32 reference of the original (unfused) module in eval mode."""
    h = x @ params["w1"] + params["b1"]
    h = jnp.maximum(h * params["s1"] + params["t1"], 0.0)
    h = h @ params["w2"] + params["b2"]
    h = jnp.maximum(h * params["s2"] + params["t2"], 0.0)
    h = h @ params["w3"] + params["b3"]
    h = jnp.maximum(h * params["s3"] + params["t3"], 0.0)
    return h @ params["w4"] + params["b4"]


if __name__ == "__main__":
    key = jax.random.PRNGKey(0)
    k_x, k_p = jax.random.split(key)

    batch, input_dim = 8, 32
    x = jax.random.normal(k_x, (batch, input_dim), jnp.float32)
    params = init_params(k_p, input_dim)
    prepared = prepare_params(params)

    out = mlp_forward(x, prepared)
    out = jax.block_until_ready(out)
    ref = mlp_reference(x, params)
    assert out.shape == (batch, 1)
    # bf16 MXU inputs vs f32 reference: ~1% relative error expected.
    assert jnp.allclose(out, ref, atol=5e-2, rtol=5e-2), "mismatch vs f32 reference"

    # Second check with a multi-step grid (2 tiles) to exercise the lane-packed
    # output index_map and batch padding.
    batch2 = 384
    x2 = jax.random.normal(jax.random.PRNGKey(1), (batch2, input_dim), jnp.float32)
    out2 = jax.block_until_ready(mlp_forward(x2, prepared))
    ref2 = mlp_reference(x2, params)
    assert out2.shape == (batch2, 1)
    assert jnp.allclose(out2, ref2, atol=5e-2, rtol=5e-2), "mismatch vs f32 reference (multi-tile)"

    print("KERNEL_OK")
</pallas_src>

<mosaic_0001>
module attributes {stable_mosaic.version = 11 : i64} {
  func.func @mlp_kernel(%arg0: i32, %arg1: memref<256x32xf32, #tpu.memory_space<vmem>>, %arg2: memref<32x512xbf16, #tpu.memory_space<vmem>>, %arg3: memref<1x512xf32, #tpu.memory_space<vmem>>, %arg4: memref<512x256xbf16, #tpu.memory_space<vmem>>, %arg5: memref<1x256xf32, #tpu.memory_space<vmem>>, %arg6: memref<256x256xbf16, #tpu.memory_space<vmem>>, %arg7: memref<1x256xf32, #tpu.memory_space<vmem>>, %arg8: memref<1x256xbf16, #tpu.memory_space<vmem>>, %arg9: memref<1x1xf32, #tpu.memory_space<vmem>>, %arg10: memref<1x256xf32, #tpu.memory_space<vmem>>) attributes {dimension_semantics = [#tpu.dimension_semantics<parallel>], iteration_bounds = array<i64: 1>, scalar_prefetch = 0 : i64, scratch_operands = 0 : i64, tpu.core_type = #tpu.core_type<tc>, window_params = [{transform_indices = @transform_0, window_bounds = array<i64: 256, 32>}, {pipeline_mode = #tpu.pipeline_mode<synchronous>, transform_indices = @transform_1, window_bounds = array<i64: 32, 512>}, {pipeline_mode = #tpu.pipeline_mode<synchronous>, transform_indices = @transform_2, window_bounds = array<i64: 1, 512>}, {pipeline_mode = #tpu.pipeline_mode<synchronous>, transform_indices = @transform_3, window_bounds = array<i64: 512, 256>}, {pipeline_mode = #tpu.pipeline_mode<synchronous>, transform_indices = @transform_4, window_bounds = array<i64: 1, 256>}, {pipeline_mode = #tpu.pipeline_mode<synchronous>, transform_indices = @transform_5, window_bounds = array<i64: 256, 256>}, {pipeline_mode = #tpu.pipeline_mode<synchronous>, transform_indices = @transform_6, window_bounds = array<i64: 1, 256>}, {pipeline_mode = #tpu.pipeline_mode<synchronous>, transform_indices = @transform_7, window_bounds = array<i64: 1, 256>}, {pipeline_mode = #tpu.pipeline_mode<synchronous>, transform_indices = @transform_8, window_bounds = array<i64: 1, 1>}, {transform_indices = @transform_9, window_bounds = array<i64: 1, 256>}]} {
    %c0 = arith.constant 0 : index
    %c0_0 = arith.constant 0 : index
    %0 = vector.load %arg1[%c0, %c0_0] : memref<256x32xf32, #tpu.memory_space<vmem>>, vector<256x32xf32>
    %1 = arith.truncf %0 : vector<256x32xf32> to vector<256x32xbf16>
    %c0_1 = arith.constant 0 : index
    %c0_2 = arith.constant 0 : index
    %2 = vector.load %arg2[%c0_1, %c0_2] : memref<32x512xbf16, #tpu.memory_space<vmem>>, vector<32x512xbf16>
    %cst = arith.constant dense<0.000000e+00> : vector<256x512xf32>
    %3 = tpu.matmul %1, %2, %cst {dimension_numbers = #tpu.dot_dimension_numbers<[1], [0], [0], [1], [0, 0, 1, 1], [], []>} : vector<256x32xbf16>, vector<32x512xbf16>, vector<256x512xf32> -> vector<256x512xf32>
    %c0_3 = arith.constant 0 : index
    %c0_4 = arith.constant 0 : index
    %4 = vector.load %arg3[%c0_3, %c0_4] : memref<1x512xf32, #tpu.memory_space<vmem>>, vector<1x512xf32>
    %5 = vector.broadcast %4 : vector<1x512xf32> to vector<256x512xf32>
    %6 = arith.addf %3, %5 : vector<256x512xf32>
    %cst_5 = arith.constant 0.000000e+00 : f32
    %7 = vector.broadcast %cst_5 : f32 to vector<256x512xf32>
    %8 = arith.maximumf %6, %7 : vector<256x512xf32>
    %9 = arith.truncf %8 : vector<256x512xf32> to vector<256x512xbf16>
    %c0_6 = arith.constant 0 : index
    %c0_7 = arith.constant 0 : index
    %10 = vector.load %arg4[%c0_6, %c0_7] : memref<512x256xbf16, #tpu.memory_space<vmem>>, vector<512x256xbf16>
    %cst_8 = arith.constant dense<0.000000e+00> : vector<256x256xf32>
    %11 = tpu.matmul %9, %10, %cst_8 {dimension_numbers = #tpu.dot_dimension_numbers<[1], [0], [0], [1], [0, 0, 1, 1], [], []>} : vector<256x512xbf16>, vector<512x256xbf16>, vector<256x256xf32> -> vector<256x256xf32>
    %c0_9 = arith.constant 0 : index
    %c0_10 = arith.constant 0 : index
    %12 = vector.load %arg5[%c0_9, %c0_10] : memref<1x256xf32, #tpu.memory_space<vmem>>, vector<1x256xf32>
    %13 = vector.broadcast %12 : vector<1x256xf32> to vector<256x256xf32>
    %14 = arith.addf %11, %13 : vector<256x256xf32>
    %cst_11 = arith.constant 0.000000e+00 : f32
    %15 = vector.broadcast %cst_11 : f32 to vector<256x256xf32>
    %16 = arith.maximumf %14, %15 : vector<256x256xf32>
    %17 = arith.truncf %16 : vector<256x256xf32> to vector<256x256xbf16>
    %c0_12 = arith.constant 0 : index
    %c0_13 = arith.constant 0 : index
    %18 = vector.load %arg6[%c0_12, %c0_13] : memref<256x256xbf16, #tpu.memory_space<vmem>>, vector<256x256xbf16>
    %cst_14 = arith.constant dense<0.000000e+00> : vector<256x256xf32>
    %19 = tpu.matmul %17, %18, %cst_14 {dimension_numbers = #tpu.dot_dimension_numbers<[1], [0], [0], [1], [0, 0, 1, 1], [], []>} : vector<256x256xbf16>, vector<256x256xbf16>, vector<256x256xf32> -> vector<256x256xf32>
    %c0_15 = arith.constant 0 : index
    %c0_16 = arith.constant 0 : index
    %20 = vector.load %arg7[%c0_15, %c0_16] : memref<1x256xf32, #tpu.memory_space<vmem>>, vector<1x256xf32>
    %21 = vector.broadcast %20 : vector<1x256xf32> to vector<256x256xf32>
    %22 = arith.addf %19, %21 : vector<256x256xf32>
    %cst_17 = arith.constant 0.000000e+00 : f32
    %23 = vector.broadcast %cst_17 : f32 to vector<256x256xf32>
    %24 = arith.maximumf %22, %23 : vector<256x256xf32>
    %25 = arith.truncf %24 : vector<256x256xf32> to vector<256x256xbf16>
    %c0_18 = arith.constant 0 : index
    %c0_19 = arith.constant 0 : index
    %26 = vector.load %arg8[%c0_18, %c0_19] : memref<1x256xbf16, #tpu.memory_space<vmem>>, vector<1x256xbf16>
    %cst_20 = arith.constant dense<0.000000e+00> : vector<1x256xf32>
    %27 = tpu.matmul %26, %25, %cst_20 {dimension_numbers = #tpu.dot_dimension_numbers<[1], [1], [0], [0], [0, 0, 1, 0], [], []>} : vector<1x256xbf16>, vector<256x256xbf16>, vector<1x256xf32> -> vector<1x256xf32>
    %c0_21 = arith.constant 0 : index
    %c0_22 = arith.constant 0 : index
    %28 = vector.load %arg9[%c0_21, %c0_22] : memref<1x1xf32, #tpu.memory_space<vmem>>, vector<1x1xf32>
    %29 = vector.broadcast %28 : vector<1x1xf32> to vector<1x256xf32>
    %30 = arith.addf %27, %29 : vector<1x256xf32>
    %c0_23 = arith.constant 0 : index
    %c0_24 = arith.constant 0 : index
    %31 = vector.load %arg10[%c0_23, %c0_24] : memref<1x256xf32, #tpu.memory_space<vmem>>, vector<1x256xf32>
    tpu.vector_store %arg10[%c0_23, %c0_24], %30 {strides = array<i32>} : memref<1x256xf32, #tpu.memory_space<vmem>>, vector<1x256xf32>,
    return
  }
  func.func @transform_0(%arg0: i32) -> (i32, i32) {
    %c0_i32 = arith.constant 0 : i32
    %c0_i32_0 = arith.constant 0 : i32
    return %arg0, %c0_i32 : i32, i32
  }
  func.func @transform_1(%arg0: i32) -> (i32, i32) {
    %c0_i32 = arith.constant 0 : i32
    %c0_i32_0 = arith.constant 0 : i32
    %c0_i32_1 = arith.constant 0 : i32
    return %c0_i32, %c0_i32_0 : i32, i32
  }
  func.func @transform_2(%arg0: i32) -> (i32, i32) {
    %c0_i32 = arith.constant 0 : i32
    %c0_i32_0 = arith.constant 0 : i32
    %c0_i32_1 = arith.constant 0 : i32
    return %c0_i32, %c0_i32_0 : i32, i32
  }
  func.func @transform_3(%arg0: i32) -> (i32, i32) {
    %c0_i32 = arith.constant 0 : i32
    %c0_i32_0 = arith.constant 0 : i32
    %c0_i32_1 = arith.constant 0 : i32
    return %c0_i32, %c0_i32_0 : i32, i32
  }
  func.func @transform_4(%arg0: i32) -> (i32, i32) {
    %c0_i32 = arith.constant 0 : i32
    %c0_i32_0 = arith.constant 0 : i32
    %c0_i32_1 = arith.constant 0 : i32
    return %c0_i32, %c0_i32_0 : i32, i32
  }
  func.func @transform_5(%arg0: i32) -> (i32, i32) {
    %c0_i32 = arith.constant 0 : i32
    %c0_i32_0 = arith.constant 0 : i32
    %c0_i32_1 = arith.constant 0 : i32
    return %c0_i32, %c0_i32_0 : i32, i32
  }
  func.func @transform_6(%arg0: i32) -> (i32, i32) {
    %c0_i32 = arith.constant 0 : i32
    %c0_i32_0 = arith.constant 0 : i32
    %c0_i32_1 = arith.constant 0 : i32
    return %c0_i32, %c0_i32_0 : i32, i32
  }
  func.func @transform_7(%arg0: i32) -> (i32, i32) {
    %c0_i32 = arith.constant 0 : i32
    %c0_i32_0 = arith.constant 0 : i32
    %c0_i32_1 = arith.constant 0 : i32
    return %c0_i32, %c0_i32_0 : i32, i32
  }
  func.func @transform_8(%arg0: i32) -> (i32, i32) {
    %c0_i32 = arith.constant 0 : i32
    %c0_i32_0 = arith.constant 0 : i32
    %c0_i32_1 = arith.constant 0 : i32
    return %c0_i32, %c0_i32_0 : i32, i32
  }
  func.func @transform_9(%arg0: i32) -> (i32, i32) {
    %c0_i32 = arith.constant 0 : i32
    %c0_i32_0 = arith.constant 0 : i32
    return %c0_i32, %arg0 : i32, i32
  }
}

</mosaic_0001>

<bundles_post_ra>
// kernel: tpu_custom_call.1
= control target key start
LH: loop header
LB: loop body
LE: loop exit
PB: predicated region body
PF: predicated region fallthrough
CT: control target
= control target key end

     0   :  { %s3621_s0 = inlined_call_operand.vmem [shape: f32[256,32], index: 0, kind: input, shape index: {}]   ;;  %s3622_s1 = inlined_call_operand.vmem [shape: bf16[32,512], index: 1, kind: input, shape index: {}]   ;;  %s3623_s2 = inlined_call_operand.vmem [shape: f32[1,512], index: 2, kind: input, shape index: {}]   ;;  %s3624_s3 = inlined_call_operand.hbm [shape: bf16[512,256], index: 3, kind: input, shape index: {}]   ;;  %s3625_s4 = inlined_call_operand.vmem [shape: f32[1,256], index: 4, kind: input, shape index: {}]   ;;  %s3626_s5 = inlined_call_operand.vmem [shape: bf16[256,256], index: 5, kind: input, shape index: {}]   ;;  %s3627_s6 = inlined_call_operand.vmem [shape: f32[1,256], index: 6, kind: input, shape index: {}]   ;;  %s3628_s7 = inlined_call_operand.vmem [shape: bf16[1,256], index: 7, kind: input, shape index: {}]   ;;  %s3629_s8 = inlined_call_operand.<no memory space> [shape: f32[1,1], index: 8, kind: input, shape index: {}]   ;;  %s3630_s9 = inlined_call_operand.hbm [shape: f32[1,256], index: 9, kind: output, shape index: {}]  }
   0x1   :  { %v14_v0 = vstv %s3629_s8 }
   0x2   :  { %15 = vst [vmem:[#allocation2] sm:$0x1] %v14_v0 }
   0x3   :  { %16 = vsyncpa [#allocation4], 0 }
   0x4   :  { %17 = vsyncpa [#allocation5], 0  ;;  %s2761_s11 = smov [#allocation3]   ;;  %s2713_s15 = scalar_lea.hbm %s3624_s3, 8192 }
   0x5   :  { %s29_s12 = sshll.u32 %s2761_s11, 4  ;;  %p2714_p0 = scmp.ne.s32.totalorder %s3624_s3, %s2713_s15  ;;  %s30_s12 = int_to_ptr.vmem [resolvable:$true] %s29_s12 }
   0x6   :  { %p2717_p1 = scmp.lt.u32.totalorder %s2713_s15, %s3624_s3 }
   0x8   :  { %p2719_p2 = pnand %p2717_p1, %p2714_p0 }
   0xa   :  { %2722 = shalt.err (!%p2719_p2)
}
   0xb   :  { %s2723_s8 = scalar_lea.vmem %s30_s12, 8192  ;;  %p2728_p4 = scmp.lt.s32.totalorder %s30_s12, %s30_s12 }
   0xc   :  { %p2724_p3 = scmp.ne.s32.totalorder %s30_s12, %s2723_s8  ;;  %p2729_p5 = scmp.lt.s32.totalorder %s2723_s8, %s2723_s8 }
   0xe   :  { %p2730_p6 = por %p2729_p5, %p2728_p4 }
  0x10   :  { %p2731_p7 = pnand %p2730_p6, %p2724_p3 }
  0x12   :  { %2734 = shalt.err (!%p2731_p7)
}
  0x13   :  { %s2762_s20 = smov 128   ;;  %s2763_s21 = smov 8  }
  0x14   :  { %35 = dma.hbm_to_vmem [thread:$0]  %s3624_s3, 8192, %s30_s12, [#allocation4], %s2762_s20, %s2762_s20, %s2763_s21  }
  0x15   :  { %2757 = dma.done.wait [#allocation4], 8192  }
  0x16   :  { %2758 = vsyncadd [#allocation4], 4294959104  ;;  %v2764_v1 = vmov 0   ;;  %v2557_v2 = vld [vmem:[%s3622_s1 + $0x4] ss:$16 sps:$4 sm:$0xff]   ;;  %v51_v7 = vld [vmem:[%s3621_s0 + $0x8] sm:$0xff] }
  0x17   :  { %249 = vmatprep.mubr.bf16.mxu0 %v2764_v1  ;;  %329 = vmatprep.mubr.bf16.mxu1 %v2764_v1  ;;  %v2559_v3 = vld [vmem:[%s3622_s1] ss:$16 sps:$4 sm:$0xff]   ;;  %v2560_v4 = vld [vmem:[%s3622_s1 + $0x24] ss:$16 sps:$4 sm:$0xff]   ;;  %vm168_vm0 = vcmask 261120   ;;  %v67_v10 = vld [vmem:[%s3621_s0 + $0x88] sm:$0xff] }
  0x18   :  { %2556 = vset.pattern.permute.xlu0 %v2764_v1  ;;  %217 = vmatprep.subr.bf16.mxu0 %v2557_v2  ;;  %v2562_v5 = vld [vmem:[%s3622_s1 + $0x20] ss:$16 sps:$4 sm:$0xff]   ;;  %v2563_v12 = vld [vmem:[%s3622_s1 + $0x8] ss:$16 sps:$4 sm:$0xff]   ;;  %v2565_v13 = vld [vmem:[%s3622_s1 + $0xc] ss:$16 sps:$4 sm:$0xff]  }
  0x19   :  { %2418 = vmatprep.subr.bf16.mxu1 %v2557_v2  ;;  %218 = vmatpush1.bf16.msra.mxu0 %v2559_v3  ;;  %v50_v6 = vld [vmem:[%s3621_s0] sm:$0xff]  ;;  %v52_v14 = vld [vmem:[%s3621_s0 + $0x10] sm:$0xff]  ;;  %v53_v15 = vld [vmem:[%s3621_s0 + $0x18] sm:$0xff] }
  0x1a   :  { %2420 = vmatpush1.bf16.msra.mxu1 %v2559_v3  ;;  %219 = vmatprep.subr.bf16.mxu0 %v2560_v4  ;;  %v2853_v8 = vpack.c.bf16 %v51_v7, %v50_v6  ;;  %v66_v9 = vld [vmem:[%s3621_s0 + $0x80] sm:$0xff]  ;;  %v68_v16 = vld [vmem:[%s3621_s0 + $0x90] sm:$0xff]  ;;  %v69_v17 = vld [vmem:[%s3621_s0 + $0x98] sm:$0xff]  ;;  %v2893_v20 = vpack.c.bf16 %v53_v15, %v52_v14 }
  0x1b   :  { %2419 = vmatprep.subr.bf16.mxu1 %v2560_v4  ;;  %v2861_v11 = vpack.c.bf16 %v67_v10, %v66_v9  ;;  %v2566_v18 = vld [vmem:[%s3622_s1 + $0x28] ss:$16 sps:$4 sm:$0xff]   ;;  %v2568_v19 = vld [vmem:[%s3622_s1 + $0x2c] ss:$16 sps:$4 sm:$0xff]   ;;  %v2895_v21 = vpack.c.bf16 %v69_v17, %v68_v16  ;;  %v54_v24 = vld [vmem:[%s3621_s0 + $0x20] sm:$0xff] }
  0x1c   :  { %v2569_v22 = vld [vmem:[#allocation3] ss:$8 sps:$4 sm:$0xff]   ;;  %v2571_v23 = vld [vmem:[#allocation3 + $0x4] ss:$8 sps:$4 sm:$0xff]   ;;  %v2574_v25 = vld [vmem:[#allocation3 + $0x14] ss:$8 sps:$4 sm:$0xff]  }
  0x1d   :  { %220 = vmatpush1.bf16.msra.mxu0 %v2562_v5  ;;  %v55_v26 = vld [vmem:[%s3621_s0 + $0x28] sm:$0xff]  ;;  %v70_v27 = vld [vmem:[%s3621_s0 + $0xa0] sm:$0xff]  ;;  %v2572_v29 = vld [vmem:[#allocation3 + $0x10] ss:$8 sps:$4 sm:$0xff]  }
  0x1e   :  { %2421 = vmatpush1.bf16.msra.mxu1 %v2562_v5  ;;  %v71_v28 = vld [vmem:[%s3621_s0 + $0xa8] sm:$0xff]  ;;  %1191 = vmatprep.subr.bf16.mxu0 %v2571_v23  ;;  %v2915_v30 = vpack.c.bf16 %v55_v26, %v54_v24  ;;  %v56_v34 = vld [vmem:[%s3621_s0 + $0x30] sm:$0xff]  ;;  %v57_v36 = vld [vmem:[%s3621_s0 + $0x38] sm:$0xff] }
  0x1f   :  { %410 = vmatprep.subr.bf16.mxu1 %v2565_v13  ;;  %v2577_v31 = vld [vmem:[#allocation3 + $0x24] ss:$8 sps:$4 sm:$0xff]   ;;  %v2917_v32 = vpack.c.bf16 %v71_v28, %v70_v27  ;;  %v2575_v33 = vld [vmem:[#allocation3 + $0x20] ss:$8 sps:$4 sm:$0xff]   ;;  %v2580_v35 = vld [vmem:[#allocation3 + $0x34] ss:$8 sps:$4 sm:$0xff]   ;;  %v2937_v40 = vpack.c.bf16 %v57_v36, %v56_v34 }
  0x20   :  { %2289 = vmatmul.mubr.msk.bf16.vlgmr.msra.gmra.mrb[0].mxu0 %vm168_vm0, %v2853_v8  ;;  %v72_v37 = vld [vmem:[%s3621_s0 + $0xb0] sm:$0xff]  ;;  %v73_v38 = vld [vmem:[%s3621_s0 + $0xb8] sm:$0xff]  ;;  %v58_v43 = vld [vmem:[%s3621_s0 + $0x40] sm:$0xff] }
  0x21   :  { %259 = vmatprep.mubr.bf16.mxu0 %v2764_v1  ;;  %2297 = vmatmul.mubr.msk.bf16.vlgmr.msra.gmra.mrb[0].mxu1 %vm168_vm0, %v2861_v11  ;;  %v2578_v39 = vld [vmem:[#allocation3 + $0x30] ss:$8 sps:$4 sm:$0xff]   ;;  %v2583_v41 = vld [vmem:[#allocation3 + $0x44] ss:$8 sps:$4 sm:$0xff]   ;;  %v2939_v42 = vpack.c.bf16 %v73_v38, %v72_v37  ;;  %v2581_v45 = vld [vmem:[#allocation3 + $0x40] ss:$8 sps:$4 sm:$0xff]  }
  0x22   :  { %339 = vmatprep.mubr.bf16.mxu1 %v2764_v1  ;;  %411 = vmatpush1.bf16.msra.mxu1 %v2563_v12  ;;  %v59_v44 = vld [vmem:[%s3621_s0 + $0x48] sm:$0xff]  ;;  %v74_v46 = vld [vmem:[%s3621_s0 + $0xc0] sm:$0xff]  ;;  %v2584_v49 = vld [vmem:[#allocation3 + $0x50] ss:$8 sps:$4 sm:$0xff]  }
  0x23   :  { %412 = vmatprep.subr.bf16.mxu1 %v2568_v19  ;;  %1192 = vmatpush1.bf16.msra.mxu0 %v2569_v22  ;;  %v75_v47 = vld [vmem:[%s3621_s0 + $0xc8] sm:$0xff]  ;;  %v2586_v48 = vld [vmem:[#allocation3 + $0x54] ss:$8 sps:$4 sm:$0xff]   ;;  %v2959_v51 = vpack.c.bf16 %v59_v44, %v58_v43  ;;  %v2590_v59 = vld [vmem:[#allocation3 + $0x70] ss:$8 sps:$4 sm:$0xff]  }
  0x24   :  { %1193 = vmatprep.subr.bf16.mxu0 %v2574_v25  ;;  %v2589_v50 = vld [vmem:[#allocation3 + $0x64] ss:$8 sps:$4 sm:$0xff]   ;;  %v2961_v52 = vpack.c.bf16 %v75_v47, %v74_v46  ;;  %v2587_v53 = vld [vmem:[#allocation3 + $0x60] ss:$8 sps:$4 sm:$0xff]   ;;  %v2592_v54 = vld [vmem:[#allocation3 + $0x74] ss:$8 sps:$4 sm:$0xff]  }
  0x25   :  { %v60_v55 = vld [vmem:[%s3621_s0 + $0x50] sm:$0xff]  ;;  %v61_v56 = vld [vmem:[%s3621_s0 + $0x58] sm:$0xff]  ;;  %v2593_v63 = vld [vmem:[#allocation3 + $0x80] ss:$8 sps:$4 sm:$0xff]  }
  0x26   :  { %413 = vmatpush1.bf16.msra.mxu1 %v2566_v18  ;;  %v76_v57 = vld [vmem:[%s3621_s0 + $0xd0] sm:$0xff]  ;;  %v77_v58 = vld [vmem:[%s3621_s0 + $0xd8] sm:$0xff]  ;;  %v2981_v61 = vpack.c.bf16 %v61_v56, %v60_v55  ;;  %v62_v2 = vld [vmem:[%s3621_s0 + $0x60] sm:$0xff] }
  0x27   :  { %1194 = vmatpush1.bf16.msra.mxu0 %v2572_v29  ;;  %v2595_v60 = vld [vmem:[#allocation3 + $0x84] ss:$8 sps:$4 sm:$0xff]   ;;  %v2983_v62 = vpack.c.bf16 %v77_v58, %v76_v57  ;;  %v2598_v0 = vld [vmem:[#allocation3 + $0x94] ss:$8 sps:$4 sm:$0xff]   ;;  %v2596_v6 = vld [vmem:[#allocation3 + $0x90] ss:$8 sps:$4 sm:$0xff]  }
  0x28   :  { %2290 = vmatmul.mubr.msk.bf16.gmra.mrb[4].mxu0 %vm168_vm0, %v2893_v20  ;;  %1195 = vmatprep.subr.bf16.mxu0 %v2577_v31  ;;  %v63_v3 = vld [vmem:[%s3621_s0 + $0x68] sm:$0xff]  ;;  %v78_v4 = vld [vmem:[%s3621_s0 + $0xe0] sm:$0xff]  ;;  %v64_v14 = vld [vmem:[%s3621_s0 + $0x70] sm:$0xff] }
  0x29   :  { %269 = vmatprep.mubr.bf16.mxu0 %v2764_v1  ;;  %2298 = vmatmul.mubr.msk.bf16.gmra.mrb[4].mxu1 %vm168_vm0, %v2895_v21  ;;  %v79_v5 = vld [vmem:[%s3621_s0 + $0xe8] sm:$0xff]  ;;  %v88_v9 = vpack.c.bf16 %v63_v3, %v62_v2  ;;  %v2604_v13 = vld [vmem:[#allocation3 + $0xb4] ss:$8 sps:$4 sm:$0xff]   ;;  %v2602_v18 = vld [vmem:[#allocation3 + $0xb0] ss:$8 sps:$4 sm:$0xff]  }
  0x2a   :  { %349 = vmatprep.mubr.bf16.mxu1 %v2764_v1  ;;  %v2601_v7 = vld [vmem:[#allocation3 + $0xa4] ss:$8 sps:$4 sm:$0xff]   ;;  %v3003_v10 = vpack.c.bf16 %v79_v5, %v78_v4  ;;  %v2599_v12 = vld [vmem:[#allocation3 + $0xa0] ss:$8 sps:$4 sm:$0xff]   ;;  %v65_v15 = vld [vmem:[%s3621_s0 + $0x78] sm:$0xff] }
  0x2b   :  { %1196 = vmatpush1.bf16.msra.mxu0 %v2575_v33  ;;  %v80_v16 = vld [vmem:[%s3621_s0 + $0xf0] sm:$0xff]  ;;  %v81_v17 = vld [vmem:[%s3621_s0 + $0xf8] sm:$0xff]  ;;  %v89_v19 = vpack.c.bf16 %v65_v15, %v64_v14  ;;  %v2605_v24 = vld [vmem:[#allocation3 + $0xc0] ss:$8 sps:$4 sm:$0xff]  }
  0x2c   :  { %1197 = vmatprep.subr.bf16.mxu0 %v2580_v35  ;;  %v2607_v22 = vld [vmem:[#allocation3 + $0xc4] ss:$8 sps:$4 sm:$0xff]   ;;  %v97_v23 = vpack.c.bf16 %v81_v17, %v80_v16  ;;  %v2610_v25 = vld [vmem:[#allocation3 + $0xd4] ss:$8 sps:$4 sm:$0xff]   ;;  %v2608_v26 = vld [vmem:[#allocation3 + $0xd0] ss:$8 sps:$4 sm:$0xff]  }
  0x2d   :  { %v2613_v27 = vld [vmem:[#allocation3 + $0xe4] ss:$8 sps:$4 sm:$0xff]   ;;  %v2611_v28 = vld [vmem:[#allocation3 + $0xe0] ss:$8 sps:$4 sm:$0xff]   ;;  %v2616_v29 = vld [vmem:[#allocation3 + $0xf4] ss:$8 sps:$4 sm:$0xff]  }
  0x2e   :  { %v3078_v31 = vld [vmem:[%s3623_s2] sm:$0xf]  ;;  %v2620_v16 = vld [vmem:[#allocation3 + $0x110] ss:$8 sps:$4 sm:$0xff]  }
  0x2f   :  { %1198 = vmatpush1.bf16.msra.mxu0 %v2578_v39  ;;  %v2622_v2 = vld [vmem:[#allocation3 + $0x114] ss:$8 sps:$4 sm:$0xff]  }
  0x30   :  { %2291 = vmatmul.mubr.msk.bf16.gmra.mrb[8].mxu0 %vm168_vm0, %v2915_v30  ;;  %1199 = vmatprep.subr.bf16.mxu0 %v2583_v41 }
  0x31   :  { %279 = vmatprep.mubr.bf16.mxu0 %v2764_v1  ;;  %2299 = vmatmul.mubr.msk.bf16.gmra.mrb[8].mxu1 %vm168_vm0, %v2917_v32 }
  0x32   :  { %359 = vmatprep.mubr.bf16.mxu1 %v2764_v1 }
  0x33   :  { %1200 = vmatpush1.bf16.msra.mxu0 %v2581_v45 }
  0x34   :  { %1201 = vmatprep.subr.bf16.mxu0 %v2586_v48 }
  0x37   :  { %1202 = vmatpush1.bf16.msra.mxu0 %v2584_v49 }
  0x38   :  { %2292 = vmatmul.mubr.msk.bf16.gmra.mrb[12].mxu0 %vm168_vm0, %v2937_v40  ;;  %1203 = vmatprep.subr.bf16.mxu0 %v2589_v50 }
  0x39   :  { %289 = vmatprep.mubr.bf16.mxu0 %v2764_v1  ;;  %2300 = vmatmul.mubr.msk.bf16.gmra.mrb[12].mxu1 %vm168_vm0, %v2939_v42 }
  0x3a   :  { %369 = vmatprep.mubr.bf16.mxu1 %v2764_v1 }
  0x3b   :  { %1204 = vmatpush1.bf16.msra.mxu0 %v2587_v53 }
  0x3c   :  { %1205 = vmatprep.subr.bf16.mxu0 %v2592_v54 }
  0x3f   :  { %1206 = vmatpush1.bf16.msra.mxu0 %v2590_v59 }
  0x40   :  { %2293 = vmatmul.mubr.msk.bf16.gmra.mrb[16].mxu0 %vm168_vm0, %v2959_v51  ;;  %1207 = vmatprep.subr.bf16.mxu0 %v2595_v60 }
  0x41   :  { %299 = vmatprep.mubr.bf16.mxu0 %v2764_v1  ;;  %2301 = vmatmul.mubr.msk.bf16.gmra.mrb[16].mxu1 %vm168_vm0, %v2961_v52 }
  0x42   :  { %379 = vmatprep.mubr.bf16.mxu1 %v2764_v1 }
  0x43   :  { %1208 = vmatpush1.bf16.msra.mxu0 %v2593_v63 }
  0x44   :  { %1209 = vmatprep.subr.bf16.mxu0 %v2598_v0 }
  0x47   :  { %1210 = vmatpush1.bf16.msra.mxu0 %v2596_v6 }
  0x48   :  { %2294 = vmatmul.mubr.msk.bf16.gmra.mrb[20].mxu0 %vm168_vm0, %v2981_v61  ;;  %1211 = vmatprep.subr.bf16.mxu0 %v2601_v7 }
  0x49   :  { %309 = vmatprep.mubr.bf16.mxu0 %v2764_v1  ;;  %2302 = vmatmul.mubr.msk.bf16.gmra.mrb[20].mxu1 %vm168_vm0, %v2983_v62 }
  0x4a   :  { %389 = vmatprep.mubr.bf16.mxu1 %v2764_v1 }
  0x4b   :  { %1212 = vmatpush1.bf16.msra.mxu0 %v2599_v12 }
  0x4c   :  { %1213 = vmatprep.subr.bf16.mxu0 %v2604_v13 }
  0x4f   :  { %1214 = vmatpush1.bf16.msra.mxu0 %v2602_v18 }
  0x50   :  { %2295 = vmatmul.mubr.msk.bf16.gmra.mrb[24].mxu0 %vm168_vm0, %v88_v9  ;;  %1215 = vmatprep.subr.bf16.mxu0 %v2607_v22 }
  0x51   :  { %319 = vmatprep.mubr.bf16.mxu0 %v2764_v1  ;;  %2303 = vmatmul.mubr.msk.bf16.gmra.mrb[24].mxu1 %vm168_vm0, %v3003_v10 }
  0x52   :  { %399 = vmatprep.mubr.bf16.mxu1 %v2764_v1 }
  0x53   :  { %1216 = vmatpush1.bf16.msra.mxu0 %v2605_v24  ;;  %v2625_v24 = vld [vmem:[#allocation3 + $0x124] ss:$8 sps:$4 sm:$0xff]  }
  0x54   :  { %1217 = vmatprep.subr.bf16.mxu0 %v2610_v25 }
  0x57   :  { %1218 = vmatpush1.bf16.msra.mxu0 %v2608_v26 }
  0x58   :  { %2296 = vmatmul.mubr.msk.bf16.gmra.mrb[28].mxu0 %vm168_vm0, %v89_v19  ;;  %1219 = vmatprep.subr.bf16.mxu0 %v2613_v27 }
  0x59   :  { %2304 = vmatmul.mubr.msk.bf16.gmra.mrb[28].mxu1 %vm168_vm0, %v97_v23 }
  0x5a   :  { %442 = vmatprep.mubr.bf16.mxu1 %v2764_v1 }
  0x5b   :  { %1220 = vmatpush1.bf16.msra.mxu0 %v2611_v28 }
  0x5c   :  { %1221 = vmatprep.subr.bf16.mxu0 %v2616_v29 }
  0x61   :  { %2305 = vmatmul.mubr.msk.bf16.vlgmr.msra.gmra.mrb[32].mxu1 %vm168_vm0, %v2853_v8  ;;  %v2614_v8 = vld [vmem:[#allocation3 + $0xf0] ss:$8 sps:$4 sm:$0xff]  }
  0x62   :  { %452 = vmatprep.mubr.bf16.mxu1 %v2764_v1  ;;  %1222 = vmatpush1.bf16.msra.mxu0 %v2614_v8 }
  0x69   :  { %2306 = vmatmul.mubr.msk.bf16.gmra.mrb[36].mxu1 %vm168_vm0, %v2893_v20  ;;  %v2619_v20 = vld [vmem:[#allocation3 + $0x104] ss:$8 sps:$4 sm:$0xff]  }
  0x6a   :  { %462 = vmatprep.mubr.bf16.mxu1 %v2764_v1  ;;  %1384 = vmatprep.subr.bf16.mxu0 %v2619_v20 }
  0x71   :  { %2307 = vmatmul.mubr.msk.bf16.gmra.mrb[40].mxu1 %vm168_vm0, %v2915_v30 }
  0x72   :  { %472 = vmatprep.mubr.bf16.mxu1 %v2764_v1 }
  0x79   :  { %2308 = vmatmul.mubr.msk.bf16.gmra.mrb[44].mxu1 %vm168_vm0, %v2937_v40 }
  0x7a   :  { %482 = vmatprep.mubr.bf16.mxu1 %v2764_v1 }
  0x81   :  { %2309 = vmatmul.mubr.msk.bf16.gmra.mrb[48].mxu1 %vm168_vm0, %v2959_v51 }
  0x82   :  { %492 = vmatprep.mubr.bf16.mxu1 %v2764_v1 }
  0x89   :  { %2310 = vmatmul.mubr.msk.bf16.gmra.mrb[52].mxu1 %vm168_vm0, %v2981_v61  ;;  %v2617_v61 = vld [vmem:[#allocation3 + $0x100] ss:$8 sps:$4 sm:$0xff]  }
  0x8a   :  { %502 = vmatprep.mubr.bf16.mxu1 %v2764_v1 }
  0x91   :  { %2311 = vmatmul.mubr.msk.bf16.gmra.mrb[56].mxu1 %vm168_vm0, %v88_v9 }
  0x92   :  { %512 = vmatprep.mubr.bf16.mxu1 %v2764_v1 }
  0x99   :  { %2312 = vmatmul.mubr.msk.bf16.gmra.mrb[60].mxu1 %vm168_vm0, %v89_v19 }
  0x9a   :  { %522 = vmatprep.mubr.bf16.mxu1 %v2764_v1 }
  0xa1   :  { %2313 = vmatmul.mubr.msk.bf16.gmra.mrb[64].mxu1 %vm168_vm0, %v2861_v11  ;;  %v108_v11 = vlaneseq }
  0xa2   :  { %532 = vmatprep.mubr.bf16.mxu1 %v2764_v1 }
  0xa3   :  { %vm2263_vm1 = vcmp.lt.s32.totalorder %v108_v11, 256 }
  0xa9   :  { %2314 = vmatmul.mubr.msk.bf16.gmra.mrb[68].mxu1 %vm168_vm0, %v2895_v21  ;;  %v3070_v21 = vshrl.u32 %v108_v11, 7 }
  0xaa   :  { %542 = vmatprep.mubr.bf16.mxu1 %v2764_v1 }
  0xab   :  { %v3073_v30 = vsub.s32 0, %v3070_v21 }
  0xb1   :  { %2315 = vmatmul.mubr.msk.bf16.gmra.mrb[72].mxu1 %vm168_vm0, %v2917_v32  ;;  %v3081_v32 = vsub.s32 1, %v3070_v21 }
  0xb2   :  { %552 = vmatprep.mubr.bf16.mxu1 %v2764_v1 }
  0xb3   :  { %v3089_v33 = vrot.slane %v3078_v31, %v3081_v32 }
  0xb9   :  { %2316 = vmatmul.mubr.msk.bf16.gmra.mrb[76].mxu1 %vm168_vm0, %v2939_v42 }
  0xba   :  { %562 = vmatprep.mubr.bf16.mxu1 %v2764_v1 }
  0xc1   :  { %2317 = vmatmul.mubr.msk.bf16.gmra.mrb[80].mxu1 %vm168_vm0, %v2961_v52 }
  0xc2   :  { %572 = vmatprep.mubr.bf16.mxu1 %v2764_v1 }
  0xc9   :  { %2318 = vmatmul.mubr.msk.bf16.gmra.mrb[84].mxu1 %vm168_vm0, %v2983_v62 }
  0xca   :  { %582 = vmatprep.mubr.bf16.mxu1 %v2764_v1 }
  0xd1   :  { %2319 = vmatmul.mubr.msk.bf16.gmra.mrb[88].mxu1 %vm168_vm0, %v3003_v10 }
  0xd2   :  { %592 = vmatprep.mubr.bf16.mxu1 %v2764_v1  ;;  %v3085_v1 = vrot.slane %v3078_v31, %v3073_v30 }
  0xd9   :  { %2320 = vmatmul.mubr.msk.bf16.gmra.mrb[92].mxu1 %vm168_vm0, %v97_v23 }
  0xf3   :  { %v251_v34 = vpop.f32.mrb[0].mxu0 }
  0xf4   :  { %v252_v35 = vadd.f32 %v251_v34, %v3085_v1  ;;  %v253_v36 = vpop.f32.mrb[1].mxu0  ;;  %v331_v37 = vpop.f32.mrb[0].mxu1 }
  0xf5   :  { %v254_v38 = vadd.f32 %v253_v36, %v3089_v33  ;;  %v255_v39 = vpop.f32.mrb[2].mxu0  ;;  %v332_v40 = vadd.f32 %v331_v37, %v3085_v1  ;;  %v333_v41 = vpop.f32.mrb[1].mxu1  ;;  %v2623_v36 = vld [vmem:[#allocation3 + $0x120] ss:$8 sps:$4 sm:$0xff]  }
  0xf6   :  { %v256_v42 = vadd.f32 %v255_v39, %v3085_v1  ;;  %v257_v43 = vpop.f32.mrb[3].mxu0  ;;  %v334_v44 = vadd.f32 %v333_v41, %v3089_v33  ;;  %v335_v45 = vpop.f32.mrb[2].mxu1  ;;  %v603_v50 = vmax.f32 %v252_v35, 0.0 }
  0xf7   :  { %v258_v46 = vadd.f32 %v257_v43, %v3089_v33  ;;  %v667_v47 = vmax.f32 %v332_v40, 0.0  ;;  %v336_v48 = vadd.f32 %v335_v45, %v3085_v1  ;;  %v337_v49 = vpop.f32.mrb[3].mxu1  ;;  %v604_v54 = vmax.f32 %v254_v38, 0.0  ;;  %v2628_v40 = vld [vmem:[#allocation3 + $0x134] ss:$8 sps:$4 sm:$0xff]  }
  0xf8   :  { %v607_v51 = vmax.f32 %v256_v42, 0.0  ;;  %v668_v52 = vmax.f32 %v334_v44, 0.0  ;;  %v338_v53 = vadd.f32 %v337_v49, %v3089_v33 }
  0xf9   :  { %v608_v55 = vmax.f32 %v258_v46, 0.0  ;;  %v671_v56 = vmax.f32 %v336_v48, 0.0 }
  0xfa   :  { %v731_v57 = vpack.c.bf16 %v607_v51, %v603_v50  ;;  %v672_v58 = vmax.f32 %v338_v53, 0.0 }
  0xfb   :  { %v732_v59 = vpack.c.bf16 %v608_v55, %v604_v54  ;;  %v261_v60 = vpop.f32.mrb[4].mxu0  ;;  %v3099_v62 = vpack.c.bf16 %v671_v56, %v667_v47 }
  0xfc   :  { %v262_v63 = vadd.f32 %v261_v60, %v3085_v1  ;;  %v263_v0 = vpop.f32.mrb[5].mxu0  ;;  %v3102_v3 = vpack.c.bf16 %v672_v58, %v668_v52  ;;  %v341_v4 = vpop.f32.mrb[4].mxu1  ;;  %v2626_v52 = vld [vmem:[#allocation3 + $0x130] ss:$8 sps:$4 sm:$0xff]   ;;  %v2631_v58 = vld [vmem:[#allocation3 + $0x144] ss:$8 sps:$4 sm:$0xff]  }
  0xfd   :  { %v264_v5 = vadd.f32 %v263_v0, %v3089_v33  ;;  %v265_v6 = vpop.f32.mrb[6].mxu0  ;;  %1223 = vmatprep.mubr.bf16.mxu0 %v732_v59  ;;  %v342_v7 = vadd.f32 %v341_v4, %v3085_v1  ;;  %v343_v9 = vpop.f32.mrb[5].mxu1 }
  0xfe   :  { %v266_v10 = vadd.f32 %v265_v6, %v3085_v1  ;;  %v267_v12 = vpop.f32.mrb[7].mxu0  ;;  %1224 = vmatmul.mubr.bf16.vlgmr.msra.gmra.mrb[32].mxu0 %v731_v57  ;;  %v344_v13 = vadd.f32 %v343_v9, %v3089_v33  ;;  %v345_v14 = vpop.f32.mrb[6].mxu1  ;;  %v611_v22 = vmax.f32 %v262_v63, 0.0 }
  0xff   :  { %v268_v15 = vadd.f32 %v267_v12, %v3089_v33  ;;  %1385 = vmatpush1.bf16.msra.mxu0 %v2617_v61  ;;  %v675_v17 = vmax.f32 %v342_v7, 0.0  ;;  %v346_v18 = vadd.f32 %v345_v14, %v3085_v1  ;;  %v347_v19 = vpop.f32.mrb[7].mxu1  ;;  %v612_v27 = vmax.f32 %v264_v5, 0.0  ;;  %v2629_v7 = vld [vmem:[#allocation3 + $0x140] ss:$8 sps:$4 sm:$0xff]  }
 0x100   :  { %v615_v23 = vmax.f32 %v266_v10, 0.0  ;;  %1386 = vmatprep.subr.bf16.mxu0 %v2622_v2  ;;  %v676_v25 = vmax.f32 %v344_v13, 0.0  ;;  %v348_v26 = vadd.f32 %v347_v19, %v3089_v33  ;;  %v2634_v13 = vld [vmem:[#allocation3 + $0x154] ss:$8 sps:$4 sm:$0xff]  }
 0x101   :  { %v616_v28 = vmax.f32 %v268_v15, 0.0  ;;  %v679_v29 = vmax.f32 %v346_v18, 0.0 }
 0x102   :  { %v735_v8 = vpack.c.bf16 %v615_v23, %v611_v22  ;;  %v680_v20 = vmax.f32 %v348_v26, 0.0 }
 0x103   :  { %v736_v34 = vpack.c.bf16 %v616_v28, %v612_v27  ;;  %v271_v35 = vpop.f32.mrb[8].mxu0  ;;  %1387 = vmatpush1.bf16.msra.mxu0 %v2620_v16  ;;  %v3111_v37 = vpack.c.bf16 %v679_v29, %v675_v17  ;;  %v2632_v27 = vld [vmem:[#allocation3 + $0x150] ss:$8 sps:$4 sm:$0xff]  }
 0x104   :  { %v272_v38 = vadd.f32 %v271_v35, %v3085_v1  ;;  %v273_v39 = vpop.f32.mrb[9].mxu0  ;;  %1388 = vmatprep.subr.bf16.mxu0 %v2625_v24  ;;  %v3114_v41 = vpack.c.bf16 %v680_v20, %v676_v25  ;;  %v351_v42 = vpop.f32.mrb[8].mxu1  ;;  %v2637_v35 = vld [vmem:[#allocation3 + $0x164] ss:$8 sps:$4 sm:$0xff]  }
 0x105   :  { %v274_v43 = vadd.f32 %v273_v39, %v3089_v33  ;;  %v275_v44 = vpop.f32.mrb[10].mxu0  ;;  %1233 = vmatprep.mubr.bf16.mxu0 %v736_v34  ;;  %v352_v45 = vadd.f32 %v351_v42, %v3085_v1  ;;  %v353_v46 = vpop.f32.mrb[9].mxu1 }
 0x106   :  { %v276_v47 = vadd.f32 %v275_v44, %v3085_v1  ;;  %v277_v48 = vpop.f32.mrb[11].mxu0  ;;  %1234 = vmatmul.mubr.bf16.gmra.mrb[36].mxu0 %v735_v8  ;;  %v354_v49 = vadd.f32 %v353_v46, %v3089_v33  ;;  %v355_v50 = vpop.f32.mrb[10].mxu1  ;;  %v619_v56 = vmax.f32 %v272_v38, 0.0 }
 0x107   :  { %v278_v51 = vadd.f32 %v277_v48, %v3089_v33  ;;  %1389 = vmatpush1.bf16.msra.mxu0 %v2623_v36  ;;  %v683_v53 = vmax.f32 %v352_v45, 0.0  ;;  %v356_v54 = vadd.f32 %v355_v50, %v3085_v1  ;;  %v357_v55 = vpop.f32.mrb[11].mxu1  ;;  %v620_v61 = vmax.f32 %v274_v43, 0.0 }
 0x108   :  { %v623_v57 = vmax.f32 %v276_v47, 0.0  ;;  %1390 = vmatprep.subr.bf16.mxu0 %v2628_v40  ;;  %v684_v59 = vmax.f32 %v354_v49, 0.0  ;;  %v358_v60 = vadd.f32 %v357_v55, %v3089_v33  ;;  %v2635_v47 = vld [vmem:[#allocation3 + $0x160] ss:$8 sps:$4 sm:$0xff]  }
 0x109   :  { %v624_v63 = vmax.f32 %v278_v51, 0.0  ;;  %v687_v0 = vmax.f32 %v356_v54, 0.0  ;;  %v2640_v51 = vld [vmem:[#allocation3 + $0x174] ss:$8 sps:$4 sm:$0xff]  }
 0x10a   :  { %v739_v2 = vpack.c.bf16 %v623_v57, %v619_v56  ;;  %v688_v4 = vmax.f32 %v358_v60, 0.0 }
 0x10b   :  { %v740_v5 = vpack.c.bf16 %v624_v63, %v620_v61  ;;  %v281_v6 = vpop.f32.mrb[12].mxu0  ;;  %1391 = vmatpush1.bf16.msra.mxu0 %v2626_v52  ;;  %v3123_v9 = vpack.c.bf16 %v687_v0, %v683_v53  ;;  %v2638_v0 = vld [vmem:[#allocation3 + $0x170] ss:$8 sps:$4 sm:$0xff]  }
 0x10c   :  { %v282_v10 = vadd.f32 %v281_v6, %v3085_v1  ;;  %v283_v12 = vpop.f32.mrb[13].mxu0  ;;  %1392 = vmatprep.subr.bf16.mxu0 %v2631_v58  ;;  %v3126_v14 = vpack.c.bf16 %v688_v4, %v684_v59  ;;  %v361_v15 = vpop.f32.mrb[12].mxu1 }
 0x10d   :  { %v284_v16 = vadd.f32 %v283_v12, %v3089_v33  ;;  %v285_v17 = vpop.f32.mrb[14].mxu0  ;;  %1243 = vmatprep.mubr.bf16.mxu0 %v740_v5  ;;  %v362_v18 = vadd.f32 %v361_v15, %v3085_v1  ;;  %v363_v19 = vpop.f32.mrb[13].mxu1 }
 0x10e   :  { %v286_v22 = vadd.f32 %v285_v17, %v3085_v1  ;;  %v287_v23 = vpop.f32.mrb[15].mxu0  ;;  %1244 = vmatmul.mubr.bf16.gmra.mrb[40].mxu0 %v739_v2  ;;  %v364_v24 = vadd.f32 %v363_v19, %v3089_v33  ;;  %v365_v25 = vpop.f32.mrb[14].mxu1  ;;  %v627_v20 = vmax.f32 %v282_v10, 0.0  ;;  %v2643_v10 = vld [vmem:[#allocation3 + $0x184] ss:$8 sps:$4 sm:$0xff]  }
 0x10f   :  { %v288_v26 = vadd.f32 %v287_v23, %v3089_v33  ;;  %1393 = vmatpush1.bf16.msra.mxu0 %v2629_v7  ;;  %v691_v28 = vmax.f32 %v362_v18, 0.0  ;;  %v366_v29 = vadd.f32 %v365_v25, %v3085_v1  ;;  %v367_v8 = vpop.f32.mrb[15].mxu1  ;;  %v628_v39 = vmax.f32 %v284_v16, 0.0 }
 0x110   :  { %v631_v34 = vmax.f32 %v286_v22, 0.0  ;;  %1394 = vmatprep.subr.bf16.mxu0 %v2634_v13  ;;  %v692_v36 = vmax.f32 %v364_v24, 0.0  ;;  %v368_v38 = vadd.f32 %v367_v8, %v3089_v33  ;;  %v2641_v24 = vld [vmem:[#allocation3 + $0x180] ss:$8 sps:$4 sm:$0xff]  }
 0x111   :  { %v632_v40 = vmax.f32 %v288_v26, 0.0  ;;  %v695_v42 = vmax.f32 %v366_v29, 0.0 }
 0x112   :  { %v743_v43 = vpack.c.bf16 %v631_v34, %v627_v20  ;;  %v696_v44 = vmax.f32 %v368_v38, 0.0 }
 0x113   :  { %v744_v45 = vpack.c.bf16 %v632_v40, %v628_v39  ;;  %v291_v46 = vpop.f32.mrb[16].mxu0  ;;  %1395 = vmatpush1.bf16.msra.mxu0 %v2632_v27  ;;  %v3135_v48 = vpack.c.bf16 %v695_v42, %v691_v28  ;;  %v2646_v28 = vld [vmem:[#allocation3 + $0x194] ss:$8 sps:$4 sm:$0xff]  }
 0x114   :  { %v292_v49 = vadd.f32 %v291_v46, %v3085_v1  ;;  %v293_v50 = vpop.f32.mrb[17].mxu0  ;;  %1396 = vmatprep.subr.bf16.mxu0 %v2637_v35  ;;  %v3138_v52 = vpack.c.bf16 %v696_v44, %v692_v36  ;;  %v371_v53 = vpop.f32.mrb[16].mxu1  ;;  %v2644_v44 = vld [vmem:[#allocation3 + $0x190] ss:$8 sps:$4 sm:$0xff]  }
 0x115   :  { %v294_v54 = vadd.f32 %v293_v50, %v3089_v33  ;;  %v295_v55 = vpop.f32.mrb[18].mxu0  ;;  %1253 = vmatprep.mubr.bf16.mxu0 %v744_v45  ;;  %v372_v56 = vadd.f32 %v371_v53, %v3085_v1  ;;  %v373_v57 = vpop.f32.mrb[17].mxu1 }
 0x116   :  { %v296_v58 = vadd.f32 %v295_v55, %v3085_v1  ;;  %v297_v59 = vpop.f32.mrb[19].mxu0  ;;  %1254 = vmatmul.mubr.bf16.gmra.mrb[44].mxu0 %v743_v43  ;;  %v374_v60 = vadd.f32 %v373_v57, %v3089_v33  ;;  %v375_v61 = vpop.f32.mrb[18].mxu1  ;;  %v635_v6 = vmax.f32 %v292_v49, 0.0 }
 0x117   :  { %v298_v63 = vadd.f32 %v297_v59, %v3089_v33  ;;  %1397 = vmatpush1.bf16.msra.mxu0 %v2635_v47  ;;  %v699_v2 = vmax.f32 %v372_v56, 0.0  ;;  %v376_v4 = vadd.f32 %v375_v61, %v3085_v1  ;;  %v377_v5 = vpop.f32.mrb[19].mxu1  ;;  %v636_v15 = vmax.f32 %v294_v54, 0.0 }
 0x118   :  { %v639_v7 = vmax.f32 %v296_v58, 0.0  ;;  %1398 = vmatprep.subr.bf16.mxu0 %v2640_v51  ;;  %v700_v12 = vmax.f32 %v374_v60, 0.0  ;;  %v378_v13 = vadd.f32 %v377_v5, %v3089_v33  ;;  %v2649_v51 = vld [vmem:[#allocation3 + $0x1a4] ss:$8 sps:$4 sm:$0xff]   ;;  %v2652_v5 = vld [vmem:[#allocation3 + $0x1b4] ss:$8 sps:$4 sm:$0xff]  }
 0x119   :  { %v640_v16 = vmax.f32 %v298_v63, 0.0  ;;  %v703_v17 = vmax.f32 %v376_v4, 0.0  ;;  %v2647_v63 = vld [vmem:[#allocation3 + $0x1a0] ss:$8 sps:$4 sm:$0xff]  }
 0x11a   :  { %v747_v18 = vpack.c.bf16 %v639_v7, %v635_v6  ;;  %v704_v19 = vmax.f32 %v378_v13, 0.0 }
 0x11b   :  { %v748_v22 = vpack.c.bf16 %v640_v16, %v636_v15  ;;  %v301_v23 = vpop.f32.mrb[20].mxu0  ;;  %1399 = vmatpush1.bf16.msra.mxu0 %v2638_v0  ;;  %v3147_v25 = vpack.c.bf16 %v703_v17, %v699_v2 }
 0x11c   :  { %v302_v26 = vadd.f32 %v301_v23, %v3085_v1  ;;  %v303_v27 = vpop.f32.mrb[21].mxu0  ;;  %1400 = vmatprep.subr.bf16.mxu0 %v2643_v10  ;;  %v3150_v29 = vpack.c.bf16 %v704_v19, %v700_v12  ;;  %v381_v8 = vpop.f32.mrb[20].mxu1  ;;  %v2650_v23 = vld [vmem:[#allocation3 + $0x1b0] ss:$8 sps:$4 sm:$0xff]  }
 0x11d   :  { %v304_v20 = vadd.f32 %v303_v27, %v3089_v33  ;;  %v305_v34 = vpop.f32.mrb[22].mxu0  ;;  %1263 = vmatprep.mubr.bf16.mxu0 %v748_v22  ;;  %v382_v35 = vadd.f32 %v381_v8, %v3085_v1  ;;  %v383_v36 = vpop.f32.mrb[21].mxu1 }
 0x11e   :  { %v306_v38 = vadd.f32 %v305_v34, %v3085_v1  ;;  %v307_v39 = vpop.f32.mrb[23].mxu0  ;;  %1264 = vmatmul.mubr.bf16.gmra.mrb[48].mxu0 %v747_v18  ;;  %v384_v40 = vadd.f32 %v383_v36, %v3089_v33  ;;  %v385_v42 = vpop.f32.mrb[22].mxu1  ;;  %v643_v49 = vmax.f32 %v302_v26, 0.0 }
 0x11f   :  { %v308_v43 = vadd.f32 %v307_v39, %v3089_v33  ;;  %1401 = vmatpush1.bf16.msra.mxu0 %v2641_v24  ;;  %v707_v45 = vmax.f32 %v382_v35, 0.0  ;;  %v386_v46 = vadd.f32 %v385_v42, %v3085_v1  ;;  %v387_v47 = vpop.f32.mrb[23].mxu1  ;;  %v644_v55 = vmax.f32 %v304_v20, 0.0  ;;  %v2655_v20 = vld [vmem:[#allocation3 + $0x1c4] ss:$8 sps:$4 sm:$0xff]  }
 0x120   :  { %v647_v50 = vmax.f32 %v306_v38, 0.0  ;;  %1402 = vmatprep.subr.bf16.mxu0 %v2646_v28  ;;  %v708_v53 = vmax.f32 %v384_v40, 0.0  ;;  %v388_v54 = vadd.f32 %v387_v47, %v3089_v33 }
 0x121   :  { %v648_v56 = vmax.f32 %v308_v43, 0.0  ;;  %v711_v57 = vmax.f32 %v386_v46, 0.0 }
 0x122   :  { %v751_v58 = vpack.c.bf16 %v647_v50, %v643_v49  ;;  %v712_v59 = vmax.f32 %v388_v54, 0.0 }
 0x123   :  { %v752_v60 = vpack.c.bf16 %v648_v56, %v644_v55  ;;  %v311_v61 = vpop.f32.mrb[24].mxu0  ;;  %1403 = vmatpush1.bf16.msra.mxu0 %v2644_v44  ;;  %v3159_v0 = vpack.c.bf16 %v711_v57, %v707_v45  ;;  %v2653_v45 = vld [vmem:[#allocation3 + $0x1c0] ss:$8 sps:$4 sm:$0xff]  }
 0x124   :  { %v312_v2 = vadd.f32 %v311_v61, %v3085_v1  ;;  %v313_v4 = vpop.f32.mrb[25].mxu0  ;;  %1404 = vmatprep.subr.bf16.mxu0 %v2649_v51  ;;  %v3162_v6 = vpack.c.bf16 %v712_v59, %v708_v53  ;;  %v391_v7 = vpop.f32.mrb[24].mxu1  ;;  %v2658_v51 = vld [vmem:[#allocation3 + $0x1d4] ss:$8 sps:$4 sm:$0xff]  }
 0x125   :  { %v314_v10 = vadd.f32 %v313_v4, %v3089_v33  ;;  %v315_v12 = vpop.f32.mrb[26].mxu0  ;;  %1273 = vmatprep.mubr.bf16.mxu0 %v752_v60  ;;  %v392_v13 = vadd.f32 %v391_v7, %v3085_v1  ;;  %v393_v15 = vpop.f32.mrb[25].mxu1 }
 0x126   :  { %v316_v16 = vadd.f32 %v315_v12, %v3085_v1  ;;  %v317_v17 = vpop.f32.mrb[27].mxu0  ;;  %1274 = vmatmul.mubr.bf16.gmra.mrb[52].mxu0 %v751_v58  ;;  %v394_v18 = vadd.f32 %v393_v15, %v3089_v33  ;;  %v395_v19 = vpop.f32.mrb[26].mxu1  ;;  %v651_v28 = vmax.f32 %v312_v2, 0.0  ;;  %v118_v58 = vsub.s32 2, %v3070_v21 }
 0x127   :  { %v318_v22 = vadd.f32 %v317_v17, %v3089_v33  ;;  %1405 = vmatpush1.bf16.msra.mxu0 %v2647_v63  ;;  %v715_v24 = vmax.f32 %v392_v13, 0.0  ;;  %v396_v26 = vadd.f32 %v395_v19, %v3085_v1  ;;  %v397_v27 = vpop.f32.mrb[27].mxu1  ;;  %v652_v36 = vmax.f32 %v314_v10, 0.0 }
 0x128   :  { %v655_v8 = vmax.f32 %v316_v16, 0.0  ;;  %1406 = vmatprep.subr.bf16.mxu0 %v2652_v5  ;;  %v716_v34 = vmax.f32 %v394_v18, 0.0  ;;  %v398_v35 = vadd.f32 %v397_v27, %v3089_v33  ;;  %v122_v2 = vsub.s32 3, %v3070_v21  ;;  %v2656_v5 = vld [vmem:[#allocation3 + $0x1d0] ss:$8 sps:$4 sm:$0xff]  }
 0x129   :  { %v656_v38 = vmax.f32 %v318_v22, 0.0  ;;  %v719_v39 = vmax.f32 %v396_v26, 0.0  ;;  %v2661_v18 = vld [vmem:[#allocation3 + $0x1e4] ss:$8 sps:$4 sm:$0xff]  }
 0x12a   :  { %v755_v40 = vpack.c.bf16 %v655_v8, %v651_v28  ;;  %v720_v42 = vmax.f32 %v398_v35, 0.0  ;;  %v3189_v28 = vrot.slane %v3078_v31, %v122_v2  ;;  %v2664_v35 = vld [vmem:[#allocation3 + $0x1f4] ss:$8 sps:$4 sm:$0xff]  }
 0x12b   :  { %v756_v43 = vpack.c.bf16 %v656_v38, %v652_v36  ;;  %v321_v44 = vpop.f32.mrb[28].mxu0  ;;  %1407 = vmatpush1.bf16.msra.mxu0 %v2650_v23  ;;  %v3171_v46 = vpack.c.bf16 %v719_v39, %v715_v24  ;;  %v3186_v24 = vrot.slane %v3078_v31, %v118_v58 }
 0x12c   :  { %v322_v47 = vadd.f32 %v321_v44, %v3085_v1  ;;  %v323_v49 = vpop.f32.mrb[29].mxu0  ;;  %1408 = vmatprep.subr.bf16.mxu0 %v2655_v20  ;;  %v3174_v50 = vpack.c.bf16 %v720_v42, %v716_v34  ;;  %v401_v53 = vpop.f32.mrb[28].mxu1  ;;  %v2659_v20 = vld [vmem:[#allocation3 + $0x1e0] ss:$8 sps:$4 sm:$0xff]   ;;  %v2662_v44 = vld [vmem:[#allocation3 + $0x1f0] ss:$8 sps:$4 sm:$0xff]  }
 0x12d   :  { %v324_v54 = vadd.f32 %v323_v49, %v3089_v33  ;;  %v325_v55 = vpop.f32.mrb[30].mxu0  ;;  %1283 = vmatprep.mubr.bf16.mxu0 %v756_v43  ;;  %v402_v56 = vadd.f32 %v401_v53, %v3085_v1  ;;  %v403_v57 = vpop.f32.mrb[29].mxu1 }
 0x12e   :  { %v326_v59 = vadd.f32 %v325_v55, %v3085_v1  ;;  %v327_v60 = vpop.f32.mrb[31].mxu0  ;;  %1284 = vmatmul.mubr.bf16.gmra.mrb[56].mxu0 %v755_v40  ;;  %v404_v61 = vadd.f32 %v403_v57, %v3089_v33  ;;  %v405_v63 = vpop.f32.mrb[30].mxu1  ;;  %v659_v13 = vmax.f32 %v322_v47, 0.0 }
 0x12f   :  { %v328_v4 = vadd.f32 %v327_v60, %v3089_v33  ;;  %1409 = vmatpush1.bf16.msra.mxu0 %v2653_v45  ;;  %v723_v7 = vmax.f32 %v402_v56, 0.0  ;;  %v406_v10 = vadd.f32 %v405_v63, %v3085_v1  ;;  %v407_v12 = vpop.f32.mrb[31].mxu1  ;;  %v660_v19 = vmax.f32 %v324_v54, 0.0 }
 0x130   :  { %v663_v15 = vmax.f32 %v326_v59, 0.0  ;;  %1410 = vmatprep.subr.bf16.mxu0 %v2658_v51  ;;  %v724_v16 = vmax.f32 %v404_v61, 0.0  ;;  %v408_v17 = vadd.f32 %v407_v12, %v3089_v33 }
 0x131   :  { %v664_v22 = vmax.f32 %v328_v4, 0.0  ;;  %v727_v23 = vmax.f32 %v406_v10, 0.0 }
 0x132   :  { %v759_v26 = vpack.c.bf16 %v663_v15, %v659_v13  ;;  %v728_v27 = vmax.f32 %v408_v17, 0.0 }
 0x133   :  { %v760_v1 = vpack.c.bf16 %v664_v22, %v660_v19  ;;  %1411 = vmatpush1.bf16.msra.mxu0 %v2656_v5  ;;  %v3191_v8 = vpack.c.bf16 %v727_v23, %v723_v7 }
 0x134   :  { %v3193_v34 = vpack.c.bf16 %v728_v27, %v724_v16  ;;  %1412 = vmatprep.subr.bf16.mxu0 %v2661_v18  ;;  %v444_v33 = vpop.f32.mrb[32].mxu1 }
 0x135   :  { %1293 = vmatprep.mubr.bf16.mxu0 %v760_v1  ;;  %v445_v36 = vadd.f32 %v444_v33, %v3186_v24  ;;  %v446_v38 = vpop.f32.mrb[33].mxu1 }
 0x136   :  { %1294 = vmatmul.mubr.bf16.gmra.mrb[60].mxu0 %v759_v26  ;;  %v447_v39 = vadd.f32 %v446_v38, %v3189_v28  ;;  %v448_v40 = vpop.f32.mrb[34].mxu1 }
 0x137   :  { %1303 = vmatprep.mubr.bf16.mxu0 %v3102_v3  ;;  %1413 = vmatpush1.bf16.msra.mxu0 %v2659_v20  ;;  %v605_v31 = vmax.f32 %v445_v36, 0.0  ;;  %v449_v42 = vadd.f32 %v448_v40, %v3186_v24  ;;  %v450_v43 = vpop.f32.mrb[35].mxu1 }
 0x138   :  { %v606_v45 = vmax.f32 %v447_v39, 0.0  ;;  %v451_v47 = vadd.f32 %v450_v43, %v3189_v28  ;;  %1414 = vmatprep.subr.bf16.mxu0 %v2664_v35 }
 0x139   :  { %v609_v49 = vmax.f32 %v449_v42, 0.0 }
 0x13a   :  { %v610_v51 = vmax.f32 %v451_v47, 0.0 }
 0x13b   :  { %v3200_v53 = vpack.c.bf16 %v609_v49, %v605_v31  ;;  %1415 = vmatpush1.bf16.msra.mxu0 %v2662_v44 }
 0x13c   :  { %v3202_v54 = vpack.c.bf16 %v610_v51, %v606_v45  ;;  %v454_v55 = vpop.f32.mrb[36].mxu1 }
 0x13d   :  { %v455_v3 = vadd.f32 %v454_v55, %v3186_v24  ;;  %v456_v56 = vpop.f32.mrb[37].mxu1 }
 0x13e   :  { %1304 = vmatmul.mubr.bf16.gmra.mrb[64].mxu0 %v3099_v62  ;;  %v457_v57 = vadd.f32 %v456_v56, %v3189_v28  ;;  %v458_v58 = vpop.f32.mrb[38].mxu1 }
 0x13f   :  { %1313 = vmatprep.mubr.bf16.mxu0 %v3114_v41  ;;  %v613_v59 = vmax.f32 %v455_v3, 0.0  ;;  %v459_v60 = vadd.f32 %v458_v58, %v3186_v24  ;;  %v460_v61 = vpop.f32.mrb[39].mxu1  ;;  %v2667_v58 = vld [vmem:[%s3626_s5 + $0x4] ss:$8 sps:$4 sm:$0xff]  }
 0x140   :  { %v614_v63 = vmax.f32 %v457_v57, 0.0  ;;  %v461_v2 = vadd.f32 %v460_v61, %v3189_v28  ;;  %v2665_v57 = vld [vmem:[%s3626_s5] ss:$8 sps:$4 sm:$0xff]   ;;  %1877 = vmatprep.subr.bf16.mxu1 %v2667_v58  ;;  %v2674_v58 = vld [vmem:[%s3626_s5 + $0x30] ss:$8 sps:$4 sm:$0xff]  }
 0x141   :  { %v617_v4 = vmax.f32 %v459_v60, 0.0  ;;  %1878 = vmatpush1.bf16.msra.mxu1 %v2665_v57 }
 0x142   :  { %v618_v5 = vmax.f32 %v461_v2, 0.0 }
 0x143   :  { %v3210_v7 = vpack.c.bf16 %v617_v4, %v613_v59 }
 0x144   :  { %v3212_v10 = vpack.c.bf16 %v618_v5, %v614_v63  ;;  %v464_v12 = vpop.f32.mrb[40].mxu1 }
 0x145   :  { %v465_v62 = vadd.f32 %v464_v12, %v3186_v24  ;;  %v466_v13 = vpop.f32.mrb[41].mxu1 }
 0x146   :  { %1314 = vmatmul.mubr.bf16.gmra.mrb[68].mxu0 %v3111_v37  ;;  %v467_v41 = vadd.f32 %v466_v13, %v3189_v28  ;;  %v468_v15 = vpop.f32.mrb[42].mxu1 }
 0x147   :  { %1323 = vmatprep.mubr.bf16.mxu0 %v3126_v14  ;;  %v621_v16 = vmax.f32 %v465_v62, 0.0  ;;  %v469_v17 = vadd.f32 %v468_v15, %v3186_v24  ;;  %v470_v18 = vpop.f32.mrb[43].mxu1 }
 0x148   :  { %v622_v19 = vmax.f32 %v467_v41, 0.0  ;;  %v471_v22 = vadd.f32 %v470_v18, %v3189_v28 }
 0x149   :  { %v625_v23 = vmax.f32 %v469_v17, 0.0  ;;  %v2670_v17 = vld [vmem:[%s3626_s5 + $0x14] ss:$8 sps:$4 sm:$0xff]  }
 0x14a   :  { %v626_v26 = vmax.f32 %v471_v22, 0.0  ;;  %1879 = vmatprep.subr.bf16.mxu1 %v2670_v17 }
 0x14b   :  { %v3220_v27 = vpack.c.bf16 %v625_v23, %v621_v16  ;;  %v2668_v16 = vld [vmem:[%s3626_s5 + $0x10] ss:$8 sps:$4 sm:$0xff]  }
 0x14c   :  { %v3222_v1 = vpack.c.bf16 %v626_v26, %v622_v19  ;;  %v474_v20 = vpop.f32.mrb[44].mxu1  ;;  %1880 = vmatpush1.bf16.msra.mxu1 %v2668_v16 }
 0x14d   :  { %v475_v37 = vadd.f32 %v474_v20, %v3186_v24  ;;  %v476_v33 = vpop.f32.mrb[45].mxu1 }
 0x14e   :  { %1324 = vmatmul.mubr.bf16.gmra.mrb[72].mxu0 %v3123_v9  ;;  %v477_v14 = vadd.f32 %v476_v33, %v3189_v28  ;;  %v478_v35 = vpop.f32.mrb[46].mxu1 }
 0x14f   :  { %1333 = vmatprep.mubr.bf16.mxu0 %v3138_v52  ;;  %v629_v36 = vmax.f32 %v475_v37, 0.0  ;;  %v479_v38 = vadd.f32 %v478_v35, %v3186_v24  ;;  %v480_v39 = vpop.f32.mrb[47].mxu1 }
 0x150   :  { %v630_v40 = vmax.f32 %v477_v14, 0.0  ;;  %v481_v31 = vadd.f32 %v480_v39, %v3189_v28  ;;  %v2671_v39 = vld [vmem:[%s3626_s5 + $0x20] ss:$8 sps:$4 sm:$0xff]  }
 0x151   :  { %v633_v42 = vmax.f32 %v479_v38, 0.0 }
 0x152   :  { %v634_v43 = vmax.f32 %v481_v31, 0.0 }
 0x153   :  { %v3230_v44 = vpack.c.bf16 %v633_v42, %v629_v36 }
 0x154   :  { %v3232_v45 = vpack.c.bf16 %v634_v43, %v630_v40  ;;  %v484_v47 = vpop.f32.mrb[48].mxu1  ;;  %v2673_v40 = vld [vmem:[%s3626_s5 + $0x24] ss:$8 sps:$4 sm:$0xff]  }
 0x155   :  { %v485_v9 = vadd.f32 %v484_v47, %v3186_v24  ;;  %v486_v49 = vpop.f32.mrb[49].mxu1  ;;  %1881 = vmatprep.subr.bf16.mxu1 %v2673_v40 }
 0x156   :  { %1334 = vmatmul.mubr.bf16.gmra.mrb[76].mxu0 %v3135_v48  ;;  %v487_v52 = vadd.f32 %v486_v49, %v3189_v28  ;;  %v488_v51 = vpop.f32.mrb[50].mxu1  ;;  %1882 = vmatpush1.bf16.msra.mxu1 %v2671_v39 }
 0x157   :  { %1343 = vmatprep.mubr.bf16.mxu0 %v3150_v29  ;;  %v637_v55 = vmax.f32 %v485_v9, 0.0  ;;  %v489_v3 = vadd.f32 %v488_v51, %v3186_v24  ;;  %v490_v56 = vpop.f32.mrb[51].mxu1 }
 0x158   :  { %v638_v59 = vmax.f32 %v487_v52, 0.0  ;;  %v491_v48 = vadd.f32 %v490_v56, %v3189_v28 }
 0x159   :  { %v641_v60 = vmax.f32 %v489_v3, 0.0 }
 0x15a   :  { %v642_v61 = vmax.f32 %v491_v48, 0.0 }
 0x15b   :  { %v3246_v29 = vpack.c.bf16 %v641_v60, %v637_v55 }
 0x15c   :  { %v3248_v63 = vpack.c.bf16 %v642_v61, %v638_v59  ;;  %v494_v2 = vpop.f32.mrb[52].mxu1  ;;  %v2676_v59 = vld [vmem:[%s3626_s5 + $0x34] ss:$8 sps:$4 sm:$0xff]  }
 0x15d   :  { %v495_v4 = vadd.f32 %v494_v2, %v3186_v24  ;;  %v496_v5 = vpop.f32.mrb[53].mxu1  ;;  %1883 = vmatprep.subr.bf16.mxu1 %v2676_v59  ;;  %v2689_v59 = vld [vmem:[%s3626_s5 + $0x80] ss:$8 sps:$4 sm:$0xff]  }
 0x15e   :  { %1344 = vmatmul.mubr.bf16.gmra.mrb[80].mxu0 %v3147_v25  ;;  %v497_v12 = vadd.f32 %v496_v5, %v3189_v28  ;;  %v498_v62 = vpop.f32.mrb[54].mxu1  ;;  %1884 = vmatpush1.bf16.msra.mxu1 %v2674_v58 }
 0x15f   :  { %1353 = vmatprep.mubr.bf16.mxu0 %v3162_v6  ;;  %v645_v13 = vmax.f32 %v495_v4, 0.0  ;;  %v499_v41 = vadd.f32 %v498_v62, %v3186_v24  ;;  %v500_v15 = vpop.f32.mrb[55].mxu1 }
 0x160   :  { %v646_v18 = vmax.f32 %v497_v12, 0.0  ;;  %v501_v25 = vadd.f32 %v500_v15, %v3189_v28  ;;  %v2679_v15 = vld [vmem:[%s3626_s5 + $0x44] ss:$8 sps:$4 sm:$0xff]  }
 0x161   :  { %v649_v19 = vmax.f32 %v499_v41, 0.0  ;;  %v2677_v41 = vld [vmem:[%s3626_s5 + $0x40] ss:$8 sps:$4 sm:$0xff]   ;;  %1885 = vmatprep.subr.bf16.mxu1 %v2679_v15  ;;  %v2697_v15 = vld [vmem:[%s3626_s5 + $0xa4] ss:$8 sps:$4 sm:$0xff]  }
 0x162   :  { %v650_v22 = vmax.f32 %v501_v25, 0.0  ;;  %1886 = vmatpush1.bf16.msra.mxu1 %v2677_v41 }
 0x163   :  { %v3262_v6 = vpack.c.bf16 %v649_v19, %v645_v13 }
 0x164   :  { %v3264_v23 = vpack.c.bf16 %v650_v22, %v646_v18  ;;  %v504_v26 = vpop.f32.mrb[56].mxu1 }
 0x165   :  { %v505_v20 = vadd.f32 %v504_v26, %v3186_v24  ;;  %v506_v37 = vpop.f32.mrb[57].mxu1  ;;  %v2680_v26 = vld [vmem:[%s3626_s5 + $0x50] ss:$8 sps:$4 sm:$0xff]  }
 0x166   :  { %1354 = vmatmul.mubr.bf16.gmra.mrb[84].mxu0 %v3159_v0  ;;  %v507_v33 = vadd.f32 %v506_v37, %v3189_v28  ;;  %v508_v14 = vpop.f32.mrb[58].mxu1 }
 0x167   :  { %1363 = vmatprep.mubr.bf16.mxu0 %v3174_v50  ;;  %v653_v35 = vmax.f32 %v505_v20, 0.0  ;;  %v509_v36 = vadd.f32 %v508_v14, %v3186_v24  ;;  %v510_v38 = vpop.f32.mrb[59].mxu1 }
 0x168   :  { %v654_v31 = vmax.f32 %v507_v33, 0.0  ;;  %v511_v0 = vadd.f32 %v510_v38, %v3189_v28  ;;  %v2683_v38 = vld [vmem:[%s3626_s5 + $0x60] ss:$8 sps:$4 sm:$0xff]  }
 0x169   :  { %v657_v42 = vmax.f32 %v509_v36, 0.0 }
 0x16a   :  { %v658_v43 = vmax.f32 %v511_v0, 0.0 }
 0x16b   :  { %v3278_v50 = vpack.c.bf16 %v657_v42, %v653_v35 }
 0x16c   :  { %v3280_v47 = vpack.c.bf16 %v658_v43, %v654_v31  ;;  %v514_v9 = vpop.f32.mrb[60].mxu1  ;;  %v2688_v31 = vld [vmem:[%s3626_s5 + $0x74] ss:$8 sps:$4 sm:$0xff]  }
 0x16d   :  { %v515_v49 = vadd.f32 %v514_v9, %v3186_v24  ;;  %v516_v52 = vpop.f32.mrb[61].mxu1 }
 0x16e   :  { %1364 = vmatmul.mubr.bf16.gmra.mrb[88].mxu0 %v3171_v46  ;;  %v517_v51 = vadd.f32 %v516_v52, %v3189_v28  ;;  %v518_v55 = vpop.f32.mrb[62].mxu1 }
 0x16f   :  { %1373 = vmatprep.mubr.bf16.mxu0 %v3193_v34  ;;  %v661_v3 = vmax.f32 %v515_v49, 0.0  ;;  %v519_v56 = vadd.f32 %v518_v55, %v3186_v24  ;;  %v520_v57 = vpop.f32.mrb[63].mxu1  ;;  %v2691_v55 = vld [vmem:[%s3626_s5 + $0x84] ss:$8 sps:$4 sm:$0xff]  }
 0x170   :  { %v662_v48 = vmax.f32 %v517_v51, 0.0  ;;  %v521_v46 = vadd.f32 %v520_v57, %v3189_v28 }
 0x171   :  { %v665_v60 = vmax.f32 %v519_v56, 0.0 }
 0x172   :  { %v666_v61 = vmax.f32 %v521_v46, 0.0 }
 0x173   :  { %v3294_v34 = vpack.c.bf16 %v665_v60, %v661_v3  ;;  %v2694_v60 = vld [vmem:[%s3626_s5 + $0x94] ss:$8 sps:$4 sm:$0xff]  }
 0x174   :  { %v3296_v2 = vpack.c.bf16 %v666_v61, %v662_v48  ;;  %v524_v4 = vpop.f32.mrb[64].mxu1 }
 0x175   :  { %v525_v5 = vadd.f32 %v524_v4, %v3186_v24  ;;  %v526_v12 = vpop.f32.mrb[65].mxu1 }
 0x176   :  { %1374 = vmatmul.mubr.bf16.gmra.mrb[92].mxu0 %v3191_v8  ;;  %v527_v62 = vadd.f32 %v526_v12, %v3189_v28  ;;  %v528_v13 = vpop.f32.mrb[66].mxu1  ;;  %v2682_v8 = vld [vmem:[%s3626_s5 + $0x54] ss:$8 sps:$4 sm:$0xff]  }
 0x177   :  { %1416 = vmatprep.mubr.bf16.mxu0 %v3202_v54  ;;  %v669_v16 = vmax.f32 %v525_v5, 0.0  ;;  %v529_v17 = vadd.f32 %v528_v13, %v3186_v24  ;;  %v530_v18 = vpop.f32.mrb[67].mxu1  ;;  %1887 = vmatprep.subr.bf16.mxu1 %v2682_v8  ;;  %v2685_v54 = vld [vmem:[%s3626_s5 + $0x64] ss:$8 sps:$4 sm:$0xff]  }
 0x178   :  { %v670_v25 = vmax.f32 %v527_v62, 0.0  ;;  %v531_v19 = vadd.f32 %v530_v18, %v3189_v28  ;;  %1888 = vmatpush1.bf16.msra.mxu1 %v2680_v26  ;;  %v2700_v26 = vld [vmem:[%s3626_s5 + $0xb4] ss:$8 sps:$4 sm:$0xff]  }
 0x179   :  { %v673_v22 = vmax.f32 %v529_v17, 0.0  ;;  %1889 = vmatprep.subr.bf16.mxu1 %v2685_v54 }
 0x17a   :  { %v674_v20 = vmax.f32 %v531_v19, 0.0 }
 0x17b   :  { %v3319_v37 = vpack.c.bf16 %v673_v22, %v669_v16 }
 0x17c   :  { %v3321_v33 = vpack.c.bf16 %v674_v20, %v670_v25  ;;  %v534_v14 = vpop.f32.mrb[68].mxu1  ;;  %1890 = vmatpush1.bf16.msra.mxu1 %v2683_v38  ;;  %v2695_v25 = vld [vmem:[%s3626_s5 + $0xa0] ss:$8 sps:$4 sm:$0xff]  }
 0x17d   :  { %v535_v35 = vadd.f32 %v534_v14, %v3186_v24  ;;  %v536_v36 = vpop.f32.mrb[69].mxu1  ;;  %1891 = vmatprep.subr.bf16.mxu1 %v2688_v31 }
 0x17e   :  { %1417 = vmatmul.mubr.bf16.vlgmr.msra.gmra.mrb[32].mxu0 %v3200_v53  ;;  %v537_v39 = vadd.f32 %v536_v36, %v3189_v28  ;;  %v538_v40 = vpop.f32.mrb[70].mxu1  ;;  %v2686_v53 = vld [vmem:[%s3626_s5 + $0x70] ss:$8 sps:$4 sm:$0xff]  }
 0x17f   :  { %1426 = vmatprep.mubr.bf16.mxu0 %v3212_v10  ;;  %v677_v0 = vmax.f32 %v535_v35, 0.0  ;;  %v539_v42 = vadd.f32 %v538_v40, %v3186_v24  ;;  %v540_v43 = vpop.f32.mrb[71].mxu1  ;;  %v2703_v40 = vld [vmem:[%s3626_s5 + $0xc4] ss:$8 sps:$4 sm:$0xff]  }
 0x180   :  { %v678_v9 = vmax.f32 %v537_v39, 0.0  ;;  %v541_v49 = vadd.f32 %v540_v43, %v3189_v28  ;;  %1892 = vmatpush1.bf16.msra.mxu1 %v2686_v53  ;;  %v2706_v53 = vld [vmem:[%s3626_s5 + $0xd4] ss:$8 sps:$4 sm:$0xff]  }
 0x181   :  { %v681_v52 = vmax.f32 %v539_v42, 0.0  ;;  %1893 = vmatprep.subr.bf16.mxu1 %v2691_v55 }
 0x182   :  { %v682_v51 = vmax.f32 %v541_v49, 0.0 }
 0x183   :  { %v3341_v10 = vpack.c.bf16 %v681_v52, %v677_v0 }
 0x184   :  { %v3343_v3 = vpack.c.bf16 %v682_v51, %v678_v9  ;;  %v544_v56 = vpop.f32.mrb[72].mxu1  ;;  %1894 = vmatpush1.bf16.msra.mxu1 %v2689_v59  ;;  %v2701_v9 = vld [vmem:[%s3626_s5 + $0xc0] ss:$8 sps:$4 sm:$0xff]  }
 0x185   :  { %v545_v57 = vadd.f32 %v544_v56, %v3186_v24  ;;  %v546_v58 = vpop.f32.mrb[73].mxu1  ;;  %1895 = vmatprep.subr.bf16.mxu1 %v2694_v60 }
 0x186   :  { %1427 = vmatmul.mubr.bf16.gmra.mrb[36].mxu0 %v3210_v7  ;;  %v547_v48 = vadd.f32 %v546_v58, %v3189_v28  ;;  %v548_v46 = vpop.f32.mrb[74].mxu1  ;;  %v2692_v7 = vld [vmem:[%s3626_s5 + $0x90] ss:$8 sps:$4 sm:$0xff]  }
 0x187   :  { %1436 = vmatprep.mubr.bf16.mxu0 %v3222_v1  ;;  %v685_v61 = vmax.f32 %v545_v57, 0.0  ;;  %v549_v4 = vadd.f32 %v548_v46, %v3186_v24  ;;  %v550_v5 = vpop.f32.mrb[75].mxu1  ;;  %v2709_v46 = vld [vmem:[%s3626_s5 + $0xe4] ss:$8 sps:$4 sm:$0xff]  }
 0x188   :  { %v686_v12 = vmax.f32 %v547_v48, 0.0  ;;  %v551_v62 = vadd.f32 %v550_v5, %v3189_v28  ;;  %1896 = vmatpush1.bf16.msra.mxu1 %v2692_v7 }
 0x189   :  { %v689_v13 = vmax.f32 %v549_v4, 0.0  ;;  %1897 = vmatprep.subr.bf16.mxu1 %v2697_v15 }
 0x18a   :  { %v690_v41 = vmax.f32 %v551_v62, 0.0 }
 0x18b   :  { %v3363_v1 = vpack.c.bf16 %v689_v13, %v685_v61 }
 0x18c   :  { %v3365_v16 = vpack.c.bf16 %v690_v41, %v686_v12  ;;  %v554_v17 = vpop.f32.mrb[76].mxu1  ;;  %1898 = vmatpush1.bf16.msra.mxu1 %v2695_v25  ;;  %v2707_v12 = vld [vmem:[%s3626_s5 + $0xe0] ss:$8 sps:$4 sm:$0xff]  }
 0x18d   :  { %v555_v18 = vadd.f32 %v554_v17, %v3186_v24  ;;  %v556_v8 = vpop.f32.mrb[77].mxu1  ;;  %1899 = vmatprep.subr.bf16.mxu1 %v2700_v26 }
 0x18e   :  { %1437 = vmatmul.mubr.bf16.gmra.mrb[40].mxu0 %v3220_v27  ;;  %v557_v19 = vadd.f32 %v556_v8, %v3189_v28  ;;  %v558_v22 = vpop.f32.mrb[78].mxu1  ;;  %v2698_v27 = vld [vmem:[%s3626_s5 + $0xb0] ss:$8 sps:$4 sm:$0xff]  }
 0x18f   :  { %1446 = vmatprep.mubr.bf16.mxu0 %v3232_v45  ;;  %v693_v20 = vmax.f32 %v555_v18, 0.0  ;;  %v559_v54 = vadd.f32 %v558_v22, %v3186_v24  ;;  %v560_v14 = vpop.f32.mrb[79].mxu1 }
 0x190   :  { %v694_v35 = vmax.f32 %v557_v19, 0.0  ;;  %v561_v36 = vadd.f32 %v560_v14, %v3189_v28  ;;  %1900 = vmatpush1.bf16.msra.mxu1 %v2698_v27 }
 0x191   :  { %v697_v38 = vmax.f32 %v559_v54, 0.0  ;;  %1901 = vmatprep.subr.bf16.mxu1 %v2703_v40 }
 0x192   :  { %v698_v39 = vmax.f32 %v561_v36, 0.0 }
 0x193   :  { %v3385_v45 = vpack.c.bf16 %v697_v38, %v693_v20 }
 0x194   :  { %v3387_v31 = vpack.c.bf16 %v698_v39, %v694_v35  ;;  %v564_v0 = vpop.f32.mrb[80].mxu1  ;;  %1902 = vmatpush1.bf16.msra.mxu1 %v2701_v9 }
 0x195   :  { %v565_v42 = vadd.f32 %v564_v0, %v3186_v24  ;;  %v566_v43 = vpop.f32.mrb[81].mxu1  ;;  %1903 = vmatprep.subr.bf16.mxu1 %v2706_v53 }
 0x196   :  { %1447 = vmatmul.mubr.bf16.gmra.mrb[44].mxu0 %v3230_v44  ;;  %v567_v49 = vadd.f32 %v566_v43, %v3189_v28  ;;  %v568_v52 = vpop.f32.mrb[82].mxu1  ;;  %v2704_v44 = vld [vmem:[%s3626_s5 + $0xd0] ss:$8 sps:$4 sm:$0xff]  }
 0x197   :  { %1456 = vmatprep.mubr.bf16.mxu0 %v3248_v63  ;;  %v701_v51 = vmax.f32 %v565_v42, 0.0  ;;  %v569_v55 = vadd.f32 %v568_v52, %v3186_v24  ;;  %v570_v56 = vpop.f32.mrb[83].mxu1 }
 0x198   :  { %v702_v57 = vmax.f32 %v567_v49, 0.0  ;;  %v571_v58 = vadd.f32 %v570_v56, %v3189_v28  ;;  %1904 = vmatpush1.bf16.msra.mxu1 %v2704_v44 }
 0x199   :  { %v705_v59 = vmax.f32 %v569_v55, 0.0  ;;  %1905 = vmatprep.subr.bf16.mxu1 %v2709_v46 }
 0x19a   :  { %v706_v48 = vmax.f32 %v571_v58, 0.0 }
 0x19b   :  { %v3407_v63 = vpack.c.bf16 %v705_v59, %v701_v51 }
 0x19c   :  { %v782_v60 = vpack.c.bf16 %v706_v48, %v702_v57  ;;  %v574_v61 = vpop.f32.mrb[84].mxu1  ;;  %1906 = vmatpush1.bf16.msra.mxu1 %v2707_v12 }
 0x19d   :  { %v575_v4 = vadd.f32 %v574_v61, %v3186_v24  ;;  %v576_v5 = vpop.f32.mrb[85].mxu1 }
 0x19e   :  { %1457 = vmatmul.mubr.bf16.gmra.mrb[48].mxu0 %v3246_v29  ;;  %v577_v62 = vadd.f32 %v576_v5, %v3189_v28  ;;  %v578_v13 = vpop.f32.mrb[86].mxu1 }
 0x19f   :  { %1466 = vmatprep.mubr.bf16.mxu0 %v3264_v23  ;;  %v709_v7 = vmax.f32 %v575_v4, 0.0  ;;  %v579_v41 = vadd.f32 %v578_v13, %v3186_v24  ;;  %v580_v15 = vpop.f32.mrb[87].mxu1 }
 0x1a0   :  { %v710_v17 = vmax.f32 %v577_v62, 0.0  ;;  %v581_v18 = vadd.f32 %v580_v15, %v3189_v28 }
 0x1a1   :  { %v713_v8 = vmax.f32 %v579_v41, 0.0 }
 0x1a2   :  { %v714_v25 = vmax.f32 %v581_v18, 0.0 }
 0x1a3   :  { %v785_v19 = vpack.c.bf16 %v713_v8, %v709_v7 }
 0x1a4   :  { %v786_v22 = vpack.c.bf16 %v714_v25, %v710_v17  ;;  %v584_v26 = vpop.f32.mrb[88].mxu1 }
 0x1a5   :  { %v585_v29 = vadd.f32 %v584_v26, %v3186_v24  ;;  %v586_v20 = vpop.f32.mrb[89].mxu1 }
 0x1a6   :  { %1467 = vmatmul.mubr.bf16.gmra.mrb[52].mxu0 %v3262_v6  ;;  %v587_v23 = vadd.f32 %v586_v20, %v3189_v28  ;;  %v588_v54 = vpop.f32.mrb[90].mxu1 }
 0x1a7   :  { %1476 = vmatprep.mubr.bf16.mxu0 %v3280_v47  ;;  %v717_v14 = vmax.f32 %v585_v29, 0.0  ;;  %v589_v35 = vadd.f32 %v588_v54, %v3186_v24  ;;  %v590_v36 = vpop.f32.mrb[91].mxu1 }
 0x1a8   :  { %v718_v38 = vmax.f32 %v587_v23, 0.0  ;;  %v591_v27 = vadd.f32 %v590_v36, %v3189_v28 }
 0x1a9   :  { %v721_v39 = vmax.f32 %v589_v35, 0.0 }
 0x1aa   :  { %v722_v40 = vmax.f32 %v591_v27, 0.0 }
 0x1ab   :  { %v789_v0 = vpack.c.bf16 %v721_v39, %v717_v14 }
 0x1ac   :  { %v790_v42 = vpack.c.bf16 %v722_v40, %v718_v38  ;;  %v594_v43 = vpop.f32.mrb[92].mxu1 }
 0x1ad   :  { %v595_v9 = vadd.f32 %v594_v43, %v3186_v24  ;;  %v596_v6 = vpop.f32.mrb[93].mxu1 }
 0x1ae   :  { %1477 = vmatmul.mubr.bf16.gmra.mrb[56].mxu0 %v3278_v50  ;;  %v597_v49 = vadd.f32 %v596_v6, %v3189_v28  ;;  %v598_v47 = vpop.f32.mrb[94].mxu1  ;;  %v859_v50 = vld [vmem:[%s3625_s4] sm:$0x3] }
 0x1af   :  { %1486 = vmatprep.mubr.bf16.mxu0 %v3296_v2  ;;  %v725_v52 = vmax.f32 %v595_v9, 0.0  ;;  %v599_v53 = vadd.f32 %v598_v47, %v3186_v24  ;;  %v600_v51 = vpop.f32.mrb[95].mxu1  ;;  %v2712_v24 = vld [vmem:[%s3626_s5 + $0xf4] ss:$8 sps:$4 sm:$0xff]   ;;  %v3453_v2 = vrot.slane %v859_v50, %v3081_v32 }
 0x1b0   :  { %v726_v55 = vmax.f32 %v597_v49, 0.0  ;;  %v601_v56 = vadd.f32 %v600_v51, %v3189_v28  ;;  %v2710_v28 = vld [vmem:[%s3626_s5 + $0xf0] ss:$8 sps:$4 sm:$0xff]   ;;  %1907 = vmatprep.subr.bf16.mxu1 %v2712_v24 }
 0x1b1   :  { %v729_v57 = vmax.f32 %v599_v53, 0.0  ;;  %1908 = vmatpush1.bf16.msra.mxu1 %v2710_v28 }
 0x1b2   :  { %v730_v58 = vmax.f32 %v601_v56, 0.0 }
 0x1b3   :  { %v793_v59 = vpack.c.bf16 %v729_v57, %v725_v52 }
 0x1b4   :  { %v794_v44 = vpack.c.bf16 %v730_v58, %v726_v55 }
 0x1b6   :  { %1487 = vmatmul.mubr.bf16.gmra.mrb[60].mxu0 %v3294_v34  ;;  %v3450_v34 = vrot.slane %v859_v50, %v3073_v30 }
 0x1b7   :  { %1496 = vmatprep.mubr.bf16.mxu0 %v3321_v33 }
 0x1be   :  { %1497 = vmatmul.mubr.bf16.gmra.mrb[64].mxu0 %v3319_v37 }
 0x1bf   :  { %1506 = vmatprep.mubr.bf16.mxu0 %v3343_v3 }
 0x1c6   :  { %1507 = vmatmul.mubr.bf16.gmra.mrb[68].mxu0 %v3341_v10 }
 0x1c7   :  { %1516 = vmatprep.mubr.bf16.mxu0 %v3365_v16 }
 0x1ce   :  { %1517 = vmatmul.mubr.bf16.gmra.mrb[72].mxu0 %v3363_v1 }
 0x1cf   :  { %1526 = vmatprep.mubr.bf16.mxu0 %v3387_v31 }
 0x1d6   :  { %1527 = vmatmul.mubr.bf16.gmra.mrb[76].mxu0 %v3385_v45 }
 0x1d7   :  { %1536 = vmatprep.mubr.bf16.mxu0 %v782_v60 }
 0x1de   :  { %1537 = vmatmul.mubr.bf16.gmra.mrb[80].mxu0 %v3407_v63 }
 0x1df   :  { %1546 = vmatprep.mubr.bf16.mxu0 %v786_v22 }
 0x1e6   :  { %1547 = vmatmul.mubr.bf16.gmra.mrb[84].mxu0 %v785_v19 }
 0x1e7   :  { %1556 = vmatprep.mubr.bf16.mxu0 %v790_v42 }
 0x1ee   :  { %1557 = vmatmul.mubr.bf16.gmra.mrb[88].mxu0 %v789_v0 }
 0x1ef   :  { %1566 = vmatprep.mubr.bf16.mxu0 %v794_v44 }
 0x1f6   :  { %1567 = vmatmul.mubr.bf16.gmra.mrb[92].mxu0 %v793_v59 }
 0x251   :  { %v1418_v37 = vpop.f32.mrb[32].mxu0 }
 0x252   :  { %v2422_v33 = vadd.f32 %v1418_v37, %v3450_v34  ;;  %v1420_v10 = vpop.f32.mrb[33].mxu0 }
 0x253   :  { %v2423_v3 = vadd.f32 %v1420_v10, %v3453_v2  ;;  %v1422_v1 = vpop.f32.mrb[34].mxu0 }
 0x254   :  { %v2424_v16 = vadd.f32 %v1422_v1, %v3450_v34  ;;  %v1424_v45 = vpop.f32.mrb[35].mxu0  ;;  %v1577_v48 = vmax.f32 %v2422_v33, 0.0 }
 0x255   :  { %v2425_v31 = vadd.f32 %v1424_v45, %v3453_v2  ;;  %v1578_v63 = vmax.f32 %v2423_v3, 0.0 }
 0x256   :  { %v1579_v46 = vmax.f32 %v2424_v16, 0.0 }
 0x257   :  { %v1580_v60 = vmax.f32 %v2425_v31, 0.0 }
 0x258   :  { %v1641_v61 = vpack.c.bf16 %v1579_v46, %v1577_v48 }
 0x259   :  { %v1642_v4 = vpack.c.bf16 %v1580_v60, %v1578_v63  ;;  %v1428_v5 = vpop.f32.mrb[36].mxu0 }
 0x25a   :  { %v2426_v12 = vadd.f32 %v1428_v5, %v3450_v34  ;;  %v1430_v62 = vpop.f32.mrb[37].mxu0 }
 0x25b   :  { %v2427_v13 = vadd.f32 %v1430_v62, %v3453_v2  ;;  %v1432_v7 = vpop.f32.mrb[38].mxu0  ;;  %1909 = vmatprep.mubr.bf16.mxu1 %v1642_v4 }
 0x25c   :  { %v2428_v41 = vadd.f32 %v1432_v7, %v3450_v34  ;;  %v1434_v15 = vpop.f32.mrb[39].mxu0  ;;  %1910 = vmatmul.mubr.bf16.vlgmr.msra.gmra.mrb[96].mxu1 %v1641_v61  ;;  %v1581_v18 = vmax.f32 %v2426_v12, 0.0 }
 0x25d   :  { %v2429_v17 = vadd.f32 %v1434_v15, %v3453_v2  ;;  %v1582_v25 = vmax.f32 %v2427_v13, 0.0 }
 0x25e   :  { %v1583_v8 = vmax.f32 %v2428_v41, 0.0 }
 0x25f   :  { %v1584_v19 = vmax.f32 %v2429_v17, 0.0 }
 0x260   :  { %v1643_v22 = vpack.c.bf16 %v1583_v8, %v1581_v18 }
 0x261   :  { %v1644_v26 = vpack.c.bf16 %v1584_v19, %v1582_v25  ;;  %v1438_v29 = vpop.f32.mrb[40].mxu0 }
 0x262   :  { %v2430_v20 = vadd.f32 %v1438_v29, %v3450_v34  ;;  %v1440_v23 = vpop.f32.mrb[41].mxu0 }
 0x263   :  { %v2431_v54 = vadd.f32 %v1440_v23, %v3453_v2  ;;  %v1442_v14 = vpop.f32.mrb[42].mxu0  ;;  %1919 = vmatprep.mubr.bf16.mxu1 %v1644_v26 }
 0x264   :  { %v2432_v35 = vadd.f32 %v1442_v14, %v3450_v34  ;;  %v1444_v36 = vpop.f32.mrb[43].mxu0  ;;  %1920 = vmatmul.mubr.bf16.gmra.mrb[100].mxu1 %v1643_v22  ;;  %v1585_v27 = vmax.f32 %v2430_v20, 0.0 }
 0x265   :  { %v2433_v38 = vadd.f32 %v1444_v36, %v3453_v2  ;;  %v1586_v40 = vmax.f32 %v2431_v54, 0.0 }
 0x266   :  { %v1587_v39 = vmax.f32 %v2432_v35, 0.0 }
 0x267   :  { %v1588_v0 = vmax.f32 %v2433_v38, 0.0 }
 0x268   :  { %v1645_v42 = vpack.c.bf16 %v1587_v39, %v1585_v27 }
 0x269   :  { %v1646_v43 = vpack.c.bf16 %v1588_v0, %v1586_v40  ;;  %v1448_v9 = vpop.f32.mrb[44].mxu0 }
 0x26a   :  { %v2434_v6 = vadd.f32 %v1448_v9, %v3450_v34  ;;  %v1450_v49 = vpop.f32.mrb[45].mxu0 }
 0x26b   :  { %v2435_v47 = vadd.f32 %v1450_v49, %v3453_v2  ;;  %v1452_v52 = vpop.f32.mrb[46].mxu0  ;;  %1929 = vmatprep.mubr.bf16.mxu1 %v1646_v43 }
 0x26c   :  { %v2436_v53 = vadd.f32 %v1452_v52, %v3450_v34  ;;  %v1454_v51 = vpop.f32.mrb[47].mxu0  ;;  %1930 = vmatmul.mubr.bf16.gmra.mrb[104].mxu1 %v1645_v42  ;;  %v1589_v56 = vmax.f32 %v2434_v6, 0.0 }
 0x26d   :  { %v2437_v55 = vadd.f32 %v1454_v51, %v3453_v2  ;;  %v1590_v58 = vmax.f32 %v2435_v47, 0.0 }
 0x26e   :  { %v1591_v57 = vmax.f32 %v2436_v53, 0.0 }
 0x26f   :  { %v1592_v59 = vmax.f32 %v2437_v55, 0.0 }
 0x270   :  { %v1647_v44 = vpack.c.bf16 %v1591_v57, %v1589_v56 }
 0x271   :  { %v1648_v24 = vpack.c.bf16 %v1592_v59, %v1590_v58  ;;  %v1458_v28 = vpop.f32.mrb[48].mxu0 }
 0x272   :  { %v2438_v50 = vadd.f32 %v1458_v28, %v3450_v34  ;;  %v1460_v37 = vpop.f32.mrb[49].mxu0 }
 0x273   :  { %v2439_v33 = vadd.f32 %v1460_v37, %v3453_v2  ;;  %v1462_v10 = vpop.f32.mrb[50].mxu0  ;;  %1939 = vmatprep.mubr.bf16.mxu1 %v1648_v24 }
 0x274   :  { %v2440_v3 = vadd.f32 %v1462_v10, %v3450_v34  ;;  %v1464_v1 = vpop.f32.mrb[51].mxu0  ;;  %1940 = vmatmul.mubr.bf16.gmra.mrb[108].mxu1 %v1647_v44  ;;  %v1593_v45 = vmax.f32 %v2438_v50, 0.0 }
 0x275   :  { %v2441_v16 = vadd.f32 %v1464_v1, %v3453_v2  ;;  %v1594_v48 = vmax.f32 %v2439_v33, 0.0 }
 0x276   :  { %v1595_v31 = vmax.f32 %v2440_v3, 0.0 }
 0x277   :  { %v1596_v46 = vmax.f32 %v2441_v16, 0.0 }
 0x278   :  { %v1649_v63 = vpack.c.bf16 %v1595_v31, %v1593_v45 }
 0x279   :  { %v1650_v60 = vpack.c.bf16 %v1596_v46, %v1594_v48  ;;  %v1468_v61 = vpop.f32.mrb[52].mxu0 }
 0x27a   :  { %v2442_v4 = vadd.f32 %v1468_v61, %v3450_v34  ;;  %v1470_v5 = vpop.f32.mrb[53].mxu0 }
 0x27b   :  { %v2443_v12 = vadd.f32 %v1470_v5, %v3453_v2  ;;  %v1472_v62 = vpop.f32.mrb[54].mxu0  ;;  %1949 = vmatprep.mubr.bf16.mxu1 %v1650_v60 }
 0x27c   :  { %v2444_v13 = vadd.f32 %v1472_v62, %v3450_v34  ;;  %v1474_v7 = vpop.f32.mrb[55].mxu0  ;;  %1950 = vmatmul.mubr.bf16.gmra.mrb[112].mxu1 %v1649_v63  ;;  %v1597_v15 = vmax.f32 %v2442_v4, 0.0 }
 0x27d   :  { %v2445_v41 = vadd.f32 %v1474_v7, %v3453_v2  ;;  %v1598_v18 = vmax.f32 %v2443_v12, 0.0 }
 0x27e   :  { %v1599_v17 = vmax.f32 %v2444_v13, 0.0 }
 0x27f   :  { %v1600_v8 = vmax.f32 %v2445_v41, 0.0 }
 0x280   :  { %v1651_v25 = vpack.c.bf16 %v1599_v17, %v1597_v15 }
 0x281   :  { %v1652_v19 = vpack.c.bf16 %v1600_v8, %v1598_v18  ;;  %v1478_v22 = vpop.f32.mrb[56].mxu0 }
 0x282   :  { %v2446_v26 = vadd.f32 %v1478_v22, %v3450_v34  ;;  %v1480_v29 = vpop.f32.mrb[57].mxu0 }
 0x283   :  { %v2447_v20 = vadd.f32 %v1480_v29, %v3453_v2  ;;  %v1482_v23 = vpop.f32.mrb[58].mxu0  ;;  %1959 = vmatprep.mubr.bf16.mxu1 %v1652_v19 }
 0x284   :  { %v2448_v54 = vadd.f32 %v1482_v23, %v3450_v34  ;;  %v1484_v14 = vpop.f32.mrb[59].mxu0  ;;  %1960 = vmatmul.mubr.bf16.gmra.mrb[116].mxu1 %v1651_v25  ;;  %v1601_v36 = vmax.f32 %v2446_v26, 0.0 }
 0x285   :  { %v2449_v35 = vadd.f32 %v1484_v14, %v3453_v2  ;;  %v1602_v27 = vmax.f32 %v2447_v20, 0.0 }
 0x286   :  { %v1603_v38 = vmax.f32 %v2448_v54, 0.0 }
 0x287   :  { %v1604_v39 = vmax.f32 %v2449_v35, 0.0 }
 0x288   :  { %v1653_v40 = vpack.c.bf16 %v1603_v38, %v1601_v36 }
 0x289   :  { %v1654_v0 = vpack.c.bf16 %v1604_v39, %v1602_v27  ;;  %v1488_v42 = vpop.f32.mrb[60].mxu0 }
 0x28a   :  { %v2450_v43 = vadd.f32 %v1488_v42, %v3450_v34  ;;  %v1490_v9 = vpop.f32.mrb[61].mxu0 }
 0x28b   :  { %v2451_v6 = vadd.f32 %v1490_v9, %v3453_v2  ;;  %v1492_v49 = vpop.f32.mrb[62].mxu0  ;;  %1969 = vmatprep.mubr.bf16.mxu1 %v1654_v0 }
 0x28c   :  { %v2452_v47 = vadd.f32 %v1492_v49, %v3450_v34  ;;  %v1494_v52 = vpop.f32.mrb[63].mxu0  ;;  %1970 = vmatmul.mubr.bf16.gmra.mrb[120].mxu1 %v1653_v40  ;;  %v1605_v51 = vmax.f32 %v2450_v43, 0.0 }
 0x28d   :  { %v2453_v53 = vadd.f32 %v1494_v52, %v3453_v2  ;;  %v1606_v56 = vmax.f32 %v2451_v6, 0.0 }
 0x28e   :  { %v1607_v55 = vmax.f32 %v2452_v47, 0.0 }
 0x28f   :  { %v1608_v57 = vmax.f32 %v2453_v53, 0.0 }
 0x290   :  { %v1655_v58 = vpack.c.bf16 %v1607_v55, %v1605_v51 }
 0x291   :  { %v1656_v59 = vpack.c.bf16 %v1608_v57, %v1606_v56  ;;  %v1498_v44 = vpop.f32.mrb[64].mxu0 }
 0x292   :  { %v2454_v24 = vadd.f32 %v1498_v44, %v3450_v34  ;;  %v1500_v28 = vpop.f32.mrb[65].mxu0 }
 0x293   :  { %v2455_v50 = vadd.f32 %v1500_v28, %v3453_v2  ;;  %v1502_v37 = vpop.f32.mrb[66].mxu0  ;;  %1979 = vmatprep.mubr.bf16.mxu1 %v1656_v59 }
 0x294   :  { %v2456_v33 = vadd.f32 %v1502_v37, %v3450_v34  ;;  %v1504_v10 = vpop.f32.mrb[67].mxu0  ;;  %1980 = vmatmul.mubr.bf16.gmra.mrb[124].mxu1 %v1655_v58  ;;  %v1609_v1 = vmax.f32 %v2454_v24, 0.0 }
 0x295   :  { %v2457_v3 = vadd.f32 %v1504_v10, %v3453_v2  ;;  %v1610_v45 = vmax.f32 %v2455_v50, 0.0 }
 0x296   :  { %v1611_v16 = vmax.f32 %v2456_v33, 0.0 }
 0x297   :  { %v1612_v31 = vmax.f32 %v2457_v3, 0.0 }
 0x298   :  { %v1657_v48 = vpack.c.bf16 %v1611_v16, %v1609_v1 }
 0x299   :  { %v1658_v46 = vpack.c.bf16 %v1612_v31, %v1610_v45  ;;  %v1508_v63 = vpop.f32.mrb[68].mxu0 }
 0x29a   :  { %v2458_v60 = vadd.f32 %v1508_v63, %v3450_v34  ;;  %v1510_v61 = vpop.f32.mrb[69].mxu0 }
 0x29b   :  { %v2459_v4 = vadd.f32 %v1510_v61, %v3453_v2  ;;  %v1512_v5 = vpop.f32.mrb[70].mxu0  ;;  %1989 = vmatprep.mubr.bf16.mxu1 %v1658_v46 }
 0x29c   :  { %v2460_v12 = vadd.f32 %v1512_v5, %v3450_v34  ;;  %v1514_v62 = vpop.f32.mrb[71].mxu0  ;;  %1990 = vmatmul.mubr.bf16.gmra.mrb[128].mxu1 %v1657_v48  ;;  %v1613_v7 = vmax.f32 %v2458_v60, 0.0 }
 0x29d   :  { %v2461_v13 = vadd.f32 %v1514_v62, %v3453_v2  ;;  %v1614_v15 = vmax.f32 %v2459_v4, 0.0 }
 0x29e   :  { %v1615_v41 = vmax.f32 %v2460_v12, 0.0 }
 0x29f   :  { %v1616_v17 = vmax.f32 %v2461_v13, 0.0 }
 0x2a0   :  { %v1659_v18 = vpack.c.bf16 %v1615_v41, %v1613_v7 }
 0x2a1   :  { %v1660_v8 = vpack.c.bf16 %v1616_v17, %v1614_v15  ;;  %v1518_v25 = vpop.f32.mrb[72].mxu0 }
 0x2a2   :  { %v2462_v19 = vadd.f32 %v1518_v25, %v3450_v34  ;;  %v1520_v22 = vpop.f32.mrb[73].mxu0 }
 0x2a3   :  { %v2463_v26 = vadd.f32 %v1520_v22, %v3453_v2  ;;  %v1522_v29 = vpop.f32.mrb[74].mxu0  ;;  %1999 = vmatprep.mubr.bf16.mxu1 %v1660_v8 }
 0x2a4   :  { %v2464_v20 = vadd.f32 %v1522_v29, %v3450_v34  ;;  %v1524_v23 = vpop.f32.mrb[75].mxu0  ;;  %2000 = vmatmul.mubr.bf16.gmra.mrb[132].mxu1 %v1659_v18  ;;  %v1617_v14 = vmax.f32 %v2462_v19, 0.0 }
 0x2a5   :  { %v2465_v54 = vadd.f32 %v1524_v23, %v3453_v2  ;;  %v1618_v36 = vmax.f32 %v2463_v26, 0.0 }
 0x2a6   :  { %v1619_v35 = vmax.f32 %v2464_v20, 0.0 }
 0x2a7   :  { %v1620_v38 = vmax.f32 %v2465_v54, 0.0 }
 0x2a8   :  { %v1661_v27 = vpack.c.bf16 %v1619_v35, %v1617_v14 }
 0x2a9   :  { %v1662_v39 = vpack.c.bf16 %v1620_v38, %v1618_v36  ;;  %v1528_v40 = vpop.f32.mrb[76].mxu0 }
 0x2aa   :  { %v2466_v0 = vadd.f32 %v1528_v40, %v3450_v34  ;;  %v1530_v42 = vpop.f32.mrb[77].mxu0 }
 0x2ab   :  { %v2467_v43 = vadd.f32 %v1530_v42, %v3453_v2  ;;  %v1532_v9 = vpop.f32.mrb[78].mxu0  ;;  %2009 = vmatprep.mubr.bf16.mxu1 %v1662_v39 }
 0x2ac   :  { %v2468_v6 = vadd.f32 %v1532_v9, %v3450_v34  ;;  %v1534_v49 = vpop.f32.mrb[79].mxu0  ;;  %2010 = vmatmul.mubr.bf16.gmra.mrb[136].mxu1 %v1661_v27  ;;  %v1621_v52 = vmax.f32 %v2466_v0, 0.0 }
 0x2ad   :  { %v2469_v47 = vadd.f32 %v1534_v49, %v3453_v2  ;;  %v1622_v51 = vmax.f32 %v2467_v43, 0.0 }
 0x2ae   :  { %v1623_v53 = vmax.f32 %v2468_v6, 0.0 }
 0x2af   :  { %v1624_v55 = vmax.f32 %v2469_v47, 0.0 }
 0x2b0   :  { %v1663_v56 = vpack.c.bf16 %v1623_v53, %v1621_v52 }
 0x2b1   :  { %v1664_v57 = vpack.c.bf16 %v1624_v55, %v1622_v51  ;;  %v1538_v58 = vpop.f32.mrb[80].mxu0 }
 0x2b2   :  { %v2470_v59 = vadd.f32 %v1538_v58, %v3450_v34  ;;  %v1540_v44 = vpop.f32.mrb[81].mxu0 }
 0x2b3   :  { %v2471_v24 = vadd.f32 %v1540_v44, %v3453_v2  ;;  %v1542_v28 = vpop.f32.mrb[82].mxu0  ;;  %2019 = vmatprep.mubr.bf16.mxu1 %v1664_v57  ;;  %v2765_v44 = vmov 1966171168  }
 0x2b4   :  { %v2472_v50 = vadd.f32 %v1542_v28, %v3450_v34  ;;  %v1544_v37 = vpop.f32.mrb[83].mxu0  ;;  %2020 = vmatmul.mubr.bf16.gmra.mrb[140].mxu1 %v1663_v56  ;;  %v1625_v10 = vmax.f32 %v2470_v59, 0.0  ;;  %v1705_v56 = vld [vmem:[%s3627_s6] sm:$0x3] }
 0x2b5   :  { %v2473_v33 = vadd.f32 %v1544_v37, %v3453_v2  ;;  %v1626_v1 = vmax.f32 %v2471_v24, 0.0  ;;  %v3523_v57 = vrot.slane %v1705_v56, %v3073_v30  ;;  %v2187_v24 = vunpack.c.l.s4 %v2765_v44 }
 0x2b6   :  { %v1627_v3 = vmax.f32 %v2472_v50, 0.0 }
 0x2b7   :  { %v1628_v16 = vmax.f32 %v2473_v33, 0.0 }
 0x2b8   :  { %v1665_v45 = vpack.c.bf16 %v1627_v3, %v1625_v10  ;;  %v3534_v10 = vld.sshfl [vmem:[%s3628_s7] sm:$0x11 pattern:$0x75316420]  ;;  %v2188_v3 = vunpack.c.0.s8 %v2187_v24  ;;  %s2766_s7 = smov [#allocation6]  }
 0x2b9   :  { %v1666_v31 = vpack.c.bf16 %v1628_v16, %v1626_v1  ;;  %v1548_v48 = vpop.f32.mrb[84].mxu0  ;;  %v2185_v1 = vcombine.high %v3534_v10, %v3534_v10  ;;  %s2272_s24 = sshll.u32 %s2766_s7, 4  ;;  %s2273_s24 = int_to_ptr.vmem [resolvable:$true] %s2272_s24 }
 0x2ba   :  { %v2474_v46 = vadd.f32 %v1548_v48, %v3450_v34  ;;  %v1550_v63 = vpop.f32.mrb[85].mxu0  ;;  %s2735_s25 = scalar_lea.vmem %s2273_s24, 32  ;;  %p2740_p9 = scmp.lt.s32.totalorder %s2273_s24, %s2273_s24 }
 0x2bb   :  { %v2475_v60 = vadd.f32 %v1550_v63, %v3453_v2  ;;  %v1552_v61 = vpop.f32.mrb[86].mxu0  ;;  %2029 = vmatprep.mubr.bf16.mxu1 %v1666_v31  ;;  %v3540_v31 = vsub.s32 %v2188_v3, %v3070_v21  ;;  %p2736_p8 = scmp.ne.s32.totalorder %s2273_s24, %s2735_s25  ;;  %p2741_p10 = scmp.lt.s32.totalorder %s2735_s25, %s2735_s25 }
 0x2bc   :  { %v2476_v4 = vadd.f32 %v1552_v61, %v3450_v34  ;;  %v1554_v5 = vpop.f32.mrb[87].mxu0  ;;  %2030 = vmatmul.mubr.bf16.gmra.mrb[144].mxu1 %v1665_v45  ;;  %v1629_v62 = vmax.f32 %v2474_v46, 0.0 }
 0x2bd   :  { %v2477_v12 = vadd.f32 %v1554_v5, %v3453_v2  ;;  %v1630_v7 = vmax.f32 %v2475_v60, 0.0  ;;  %v2199_v60 = vrot.slane %v2185_v1, %v3540_v31  ;;  %p2742_p11 = por %p2741_p10, %p2740_p9 }
 0x2be   :  { %v1631_v13 = vmax.f32 %v2476_v4, 0.0 }
 0x2bf   :  { %v1632_v41 = vmax.f32 %v2477_v12, 0.0  ;;  %p2743_p12 = pnand %p2742_p11, %p2736_p8 }
 0x2c0   :  { %v1667_v15 = vpack.c.bf16 %v1631_v13, %v1629_v62 }
 0x2c1   :  { %v1668_v17 = vpack.c.bf16 %v1632_v41, %v1630_v7  ;;  %v1558_v18 = vpop.f32.mrb[88].mxu0  ;;  %v2167_v7 = vld [vmem:[#allocation2] sm:$0x1] }
 0x2c2   :  { %v2478_v8 = vadd.f32 %v1558_v18, %v3450_v34  ;;  %v1560_v25 = vpop.f32.mrb[89].mxu0  ;;  %2170 = vperm.xlu0 %2556, %v2167_v7  }
 0x2c3   :  { %v2479_v19 = vadd.f32 %v1560_v25, %v3453_v2  ;;  %v1562_v22 = vpop.f32.mrb[90].mxu0  ;;  %2039 = vmatprep.mubr.bf16.mxu1 %v1668_v17 }
 0x2c4   :  { %v2480_v26 = vadd.f32 %v1562_v22, %v3450_v34  ;;  %v1564_v29 = vpop.f32.mrb[91].mxu0  ;;  %2040 = vmatmul.mubr.bf16.gmra.mrb[148].mxu1 %v1667_v15  ;;  %v1633_v23 = vmax.f32 %v2478_v8, 0.0 }
 0x2c5   :  { %v2481_v20 = vadd.f32 %v1564_v29, %v3453_v2  ;;  %v1634_v14 = vmax.f32 %v2479_v19, 0.0 }
 0x2c6   :  { %v1635_v54 = vmax.f32 %v2480_v26, 0.0 }
 0x2c7   :  { %v1636_v35 = vmax.f32 %v2481_v20, 0.0 }
 0x2c8   :  { %v1669_v36 = vpack.c.bf16 %v1635_v54, %v1633_v23 }
 0x2c9   :  { %v1670_v38 = vpack.c.bf16 %v1636_v35, %v1634_v14  ;;  %v1568_v27 = vpop.f32.mrb[92].mxu0 }
 0x2ca   :  { %v2482_v39 = vadd.f32 %v1568_v27, %v3450_v34  ;;  %v1570_v40 = vpop.f32.mrb[93].mxu0 }
 0x2cb   :  { %v2483_v0 = vadd.f32 %v1570_v40, %v3453_v2  ;;  %v1572_v42 = vpop.f32.mrb[94].mxu0  ;;  %2049 = vmatprep.mubr.bf16.mxu1 %v1670_v38 }
 0x2cc   :  { %v2484_v43 = vadd.f32 %v1572_v42, %v3450_v34  ;;  %v1574_v9 = vpop.f32.mrb[95].mxu0  ;;  %2050 = vmatmul.mubr.bf16.gmra.mrb[152].mxu1 %v1669_v36  ;;  %v1637_v49 = vmax.f32 %v2482_v39, 0.0  ;;  %v3526_v34 = vrot.slane %v1705_v56, %v3081_v32 }
 0x2cd   :  { %v2485_v6 = vadd.f32 %v1574_v9, %v3453_v2  ;;  %v1638_v52 = vmax.f32 %v2483_v0, 0.0 }
 0x2ce   :  { %v1639_v47 = vmax.f32 %v2484_v43, 0.0 }
 0x2cf   :  { %v1640_v53 = vmax.f32 %v2485_v6, 0.0 }
 0x2d0   :  { %v1671_v51 = vpack.c.bf16 %v1639_v47, %v1637_v49 }
 0x2d1   :  { %v1672_v55 = vpack.c.bf16 %v1640_v53, %v1638_v52 }
 0x2d3   :  { %2059 = vmatprep.mubr.bf16.mxu1 %v1672_v55 }
 0x2d4   :  { %2060 = vmatmul.mubr.bf16.gmra.mrb[156].mxu1 %v1671_v51 }
 0x2d5   :  { %2234 = vmatprep.mubr.bf16.mxu1 %v2199_v60 }
 0x32f   :  { %v1911_v58 = vpop.f32.mrb[96].mxu1 }
 0x330   :  { %v1912_v2 = vadd.f32 %v1911_v58, %v3523_v57  ;;  %v1913_v59 = vpop.f32.mrb[97].mxu1 }
 0x331   :  { %v1914_v28 = vadd.f32 %v1913_v59, %v3526_v34  ;;  %v1915_v50 = vpop.f32.mrb[98].mxu1 }
 0x332   :  { %v1916_v37 = vadd.f32 %v1915_v50, %v3523_v57  ;;  %v1917_v33 = vpop.f32.mrb[99].mxu1  ;;  %v2070_v16 = vmax.f32 %v1912_v2, 0.0 }
 0x333   :  { %v1918_v32 = vadd.f32 %v1917_v33, %v3526_v34  ;;  %v2071_v48 = vmax.f32 %v1914_v28, 0.0 }
 0x334   :  { %v2072_v45 = vmax.f32 %v1916_v37, 0.0 }
 0x335   :  { %v2073_v46 = vmax.f32 %v1918_v32, 0.0 }
 0x336   :  { %v2134_v63 = vpack.c.bf16 %v2072_v45, %v2070_v16 }
 0x337   :  { %v2135_v61 = vpack.c.bf16 %v2073_v46, %v2071_v48  ;;  %v1921_v4 = vpop.f32.mrb[100].mxu1 }
 0x338   :  { %v1922_v5 = vadd.f32 %v1921_v4, %v3523_v57  ;;  %v1923_v12 = vpop.f32.mrb[101].mxu1 }
 0x339   :  { %v1924_v62 = vadd.f32 %v1923_v12, %v3526_v34  ;;  %v1925_v13 = vpop.f32.mrb[102].mxu1  ;;  %2202 = vmatprep.subr.bf16.mxu1 %v2135_v61 }
 0x33a   :  { %v1926_v41 = vadd.f32 %v1925_v13, %v3523_v57  ;;  %v1927_v21 = vpop.f32.mrb[103].mxu1  ;;  %2203 = vmatpush1.bf16.xpose.msra.mxu1 %v2134_v63  ;;  %v2074_v17 = vmax.f32 %v1922_v5, 0.0 }
 0x33b   :  { %v1928_v15 = vadd.f32 %v1927_v21, %v3526_v34  ;;  %v2075_v8 = vmax.f32 %v1924_v62, 0.0 }
 0x33c   :  { %v2076_v18 = vmax.f32 %v1926_v41, 0.0 }
 0x33d   :  { %v2077_v25 = vmax.f32 %v1928_v15, 0.0 }
 0x33e   :  { %v2136_v19 = vpack.c.bf16 %v2076_v18, %v2074_v17 }
 0x33f   :  { %v2137_v22 = vpack.c.bf16 %v2077_v25, %v2075_v8  ;;  %v1931_v26 = vpop.f32.mrb[104].mxu1 }
 0x340   :  { %v1932_v29 = vadd.f32 %v1931_v26, %v3523_v57  ;;  %v1933_v20 = vpop.f32.mrb[105].mxu1 }
 0x341   :  { %v1934_v23 = vadd.f32 %v1933_v20, %v3526_v34  ;;  %v1935_v54 = vpop.f32.mrb[106].mxu1  ;;  %2204 = vmatprep.subr.bf16.mxu1 %v2137_v22 }
 0x342   :  { %v1936_v14 = vadd.f32 %v1935_v54, %v3523_v57  ;;  %v1937_v35 = vpop.f32.mrb[107].mxu1  ;;  %2205 = vmatpush1.bf16.xpose.msra.mxu1 %v2136_v19  ;;  %v2078_v38 = vmax.f32 %v1932_v29, 0.0 }
 0x343   :  { %v1938_v36 = vadd.f32 %v1937_v35, %v3526_v34  ;;  %v2079_v39 = vmax.f32 %v1934_v23, 0.0 }
 0x344   :  { %v2080_v27 = vmax.f32 %v1936_v14, 0.0 }
 0x345   :  { %v2081_v40 = vmax.f32 %v1938_v36, 0.0 }
 0x346   :  { %v2138_v0 = vpack.c.bf16 %v2080_v27, %v2078_v38 }
 0x347   :  { %v2139_v42 = vpack.c.bf16 %v2081_v40, %v2079_v39  ;;  %v1941_v43 = vpop.f32.mrb[108].mxu1 }
 0x348   :  { %v1942_v9 = vadd.f32 %v1941_v43, %v3523_v57  ;;  %v1943_v6 = vpop.f32.mrb[109].mxu1 }
 0x349   :  { %v1944_v49 = vadd.f32 %v1943_v6, %v3526_v34  ;;  %v1945_v47 = vpop.f32.mrb[110].mxu1  ;;  %2206 = vmatprep.subr.bf16.mxu1 %v2139_v42 }
 0x34a   :  { %v1946_v52 = vadd.f32 %v1945_v47, %v3523_v57  ;;  %v1947_v53 = vpop.f32.mrb[111].mxu1  ;;  %2207 = vmatpush1.bf16.xpose.msra.mxu1 %v2138_v0  ;;  %v2082_v55 = vmax.f32 %v1942_v9, 0.0 }
 0x34b   :  { %v1948_v51 = vadd.f32 %v1947_v53, %v3526_v34  ;;  %v2083_v58 = vmax.f32 %v1944_v49, 0.0 }
 0x34c   :  { %v2084_v56 = vmax.f32 %v1946_v52, 0.0 }
 0x34d   :  { %v2085_v2 = vmax.f32 %v1948_v51, 0.0 }
 0x34e   :  { %v2140_v59 = vpack.c.bf16 %v2084_v56, %v2082_v55 }
 0x34f   :  { %v2141_v44 = vpack.c.bf16 %v2085_v2, %v2083_v58  ;;  %v1951_v24 = vpop.f32.mrb[112].mxu1 }
 0x350   :  { %v1952_v28 = vadd.f32 %v1951_v24, %v3523_v57  ;;  %v1953_v50 = vpop.f32.mrb[113].mxu1 }
 0x351   :  { %v1954_v37 = vadd.f32 %v1953_v50, %v3526_v34  ;;  %v1955_v33 = vpop.f32.mrb[114].mxu1  ;;  %2208 = vmatprep.subr.bf16.mxu1 %v2141_v44 }
 0x352   :  { %v1956_v3 = vadd.f32 %v1955_v33, %v3523_v57  ;;  %v1957_v32 = vpop.f32.mrb[115].mxu1  ;;  %2209 = vmatpush1.bf16.xpose.msra.mxu1 %v2140_v59  ;;  %v2086_v16 = vmax.f32 %v1952_v28, 0.0 }
 0x353   :  { %v1958_v1 = vadd.f32 %v1957_v32, %v3526_v34  ;;  %v2087_v48 = vmax.f32 %v1954_v37, 0.0 }
 0x354   :  { %v2088_v45 = vmax.f32 %v1956_v3, 0.0 }
 0x355   :  { %v2089_v46 = vmax.f32 %v1958_v1, 0.0 }
 0x356   :  { %v2142_v63 = vpack.c.bf16 %v2088_v45, %v2086_v16 }
 0x357   :  { %v2143_v60 = vpack.c.bf16 %v2089_v46, %v2087_v48  ;;  %v1961_v61 = vpop.f32.mrb[116].mxu1 }
 0x358   :  { %v1962_v4 = vadd.f32 %v1961_v61, %v3523_v57  ;;  %v1963_v5 = vpop.f32.mrb[117].mxu1 }
 0x359   :  { %v1964_v12 = vadd.f32 %v1963_v5, %v3526_v34  ;;  %v1965_v62 = vpop.f32.mrb[118].mxu1  ;;  %2210 = vmatprep.subr.bf16.mxu1 %v2143_v60 }
 0x35a   :  { %v1966_v13 = vadd.f32 %v1965_v62, %v3523_v57  ;;  %v1967_v7 = vpop.f32.mrb[119].mxu1  ;;  %2211 = vmatpush1.bf16.xpose.msra.mxu1 %v2142_v63  ;;  %v2090_v21 = vmax.f32 %v1962_v4, 0.0 }
 0x35b   :  { %v1968_v41 = vadd.f32 %v1967_v7, %v3526_v34  ;;  %v2091_v17 = vmax.f32 %v1964_v12, 0.0 }
 0x35c   :  { %v2092_v15 = vmax.f32 %v1966_v13, 0.0 }
 0x35d   :  { %v2093_v18 = vmax.f32 %v1968_v41, 0.0 }
 0x35e   :  { %v2144_v8 = vpack.c.bf16 %v2092_v15, %v2090_v21 }
 0x35f   :  { %v2145_v25 = vpack.c.bf16 %v2093_v18, %v2091_v17  ;;  %v1971_v19 = vpop.f32.mrb[120].mxu1 }
 0x360   :  { %v1972_v22 = vadd.f32 %v1971_v19, %v3523_v57  ;;  %v1973_v26 = vpop.f32.mrb[121].mxu1 }
 0x361   :  { %v1974_v29 = vadd.f32 %v1973_v26, %v3526_v34  ;;  %v1975_v20 = vpop.f32.mrb[122].mxu1  ;;  %2212 = vmatprep.subr.bf16.mxu1 %v2145_v25 }
 0x362   :  { %v1976_v23 = vadd.f32 %v1975_v20, %v3523_v57  ;;  %v1977_v54 = vpop.f32.mrb[123].mxu1  ;;  %2213 = vmatpush1.bf16.xpose.msra.mxu1 %v2144_v8  ;;  %v2094_v35 = vmax.f32 %v1972_v22, 0.0 }
 0x363   :  { %v1978_v14 = vadd.f32 %v1977_v54, %v3526_v34  ;;  %v2095_v38 = vmax.f32 %v1974_v29, 0.0 }
 0x364   :  { %v2096_v36 = vmax.f32 %v1976_v23, 0.0 }
 0x365   :  { %v2097_v27 = vmax.f32 %v1978_v14, 0.0 }
 0x366   :  { %v2146_v39 = vpack.c.bf16 %v2096_v36, %v2094_v35 }
 0x367   :  { %v2147_v40 = vpack.c.bf16 %v2097_v27, %v2095_v38  ;;  %v1981_v0 = vpop.f32.mrb[124].mxu1 }
 0x368   :  { %v1982_v42 = vadd.f32 %v1981_v0, %v3523_v57  ;;  %v1983_v43 = vpop.f32.mrb[125].mxu1 }
 0x369   :  { %v1984_v9 = vadd.f32 %v1983_v43, %v3526_v34  ;;  %v1985_v6 = vpop.f32.mrb[126].mxu1  ;;  %2214 = vmatprep.subr.bf16.mxu1 %v2147_v40 }
 0x36a   :  { %v1986_v49 = vadd.f32 %v1985_v6, %v3523_v57  ;;  %v1987_v47 = vpop.f32.mrb[127].mxu1  ;;  %2215 = vmatpush1.bf16.xpose.msra.mxu1 %v2146_v39  ;;  %v2098_v53 = vmax.f32 %v1982_v42, 0.0 }
 0x36b   :  { %v1988_v52 = vadd.f32 %v1987_v47, %v3526_v34  ;;  %v2099_v55 = vmax.f32 %v1984_v9, 0.0 }
 0x36c   :  { %v2100_v51 = vmax.f32 %v1986_v49, 0.0 }
 0x36d   :  { %v2101_v56 = vmax.f32 %v1988_v52, 0.0 }
 0x36e   :  { %v2148_v58 = vpack.c.bf16 %v2100_v51, %v2098_v53 }
 0x36f   :  { %v2149_v2 = vpack.c.bf16 %v2101_v56, %v2099_v55  ;;  %v1991_v59 = vpop.f32.mrb[128].mxu1 }
 0x370   :  { %v1992_v44 = vadd.f32 %v1991_v59, %v3523_v57  ;;  %v1993_v24 = vpop.f32.mrb[129].mxu1 }
 0x371   :  { %v1994_v28 = vadd.f32 %v1993_v24, %v3526_v34  ;;  %v1995_v50 = vpop.f32.mrb[130].mxu1  ;;  %2216 = vmatprep.subr.bf16.mxu1 %v2149_v2 }
 0x372   :  { %v1996_v37 = vadd.f32 %v1995_v50, %v3523_v57  ;;  %v1997_v33 = vpop.f32.mrb[131].mxu1  ;;  %2217 = vmatpush1.bf16.xpose.msra.mxu1 %v2148_v58  ;;  %v2102_v32 = vmax.f32 %v1992_v44, 0.0 }
 0x373   :  { %v1998_v3 = vadd.f32 %v1997_v33, %v3526_v34  ;;  %v2103_v16 = vmax.f32 %v1994_v28, 0.0 }
 0x374   :  { %v2104_v1 = vmax.f32 %v1996_v37, 0.0 }
 0x375   :  { %v2105_v45 = vmax.f32 %v1998_v3, 0.0 }
 0x376   :  { %v2150_v48 = vpack.c.bf16 %v2104_v1, %v2102_v32 }
 0x377   :  { %v2151_v46 = vpack.c.bf16 %v2105_v45, %v2103_v16  ;;  %v2001_v63 = vpop.f32.mrb[132].mxu1 }
 0x378   :  { %v2002_v60 = vadd.f32 %v2001_v63, %v3523_v57  ;;  %v2003_v61 = vpop.f32.mrb[133].mxu1 }
 0x379   :  { %v2004_v4 = vadd.f32 %v2003_v61, %v3526_v34  ;;  %v2005_v5 = vpop.f32.mrb[134].mxu1  ;;  %2218 = vmatprep.subr.bf16.mxu1 %v2151_v46 }
 0x37a   :  { %v2006_v12 = vadd.f32 %v2005_v5, %v3523_v57  ;;  %v2007_v62 = vpop.f32.mrb[135].mxu1  ;;  %2219 = vmatpush1.bf16.xpose.msra.mxu1 %v2150_v48  ;;  %v2106_v7 = vmax.f32 %v2002_v60, 0.0 }
 0x37b   :  { %v2008_v13 = vadd.f32 %v2007_v62, %v3526_v34  ;;  %v2107_v21 = vmax.f32 %v2004_v4, 0.0 }
 0x37c   :  { %v2108_v41 = vmax.f32 %v2006_v12, 0.0 }
 0x37d   :  { %v2109_v15 = vmax.f32 %v2008_v13, 0.0 }
 0x37e   :  { %v2152_v17 = vpack.c.bf16 %v2108_v41, %v2106_v7 }
 0x37f   :  { %v2153_v18 = vpack.c.bf16 %v2109_v15, %v2107_v21  ;;  %v2011_v8 = vpop.f32.mrb[136].mxu1 }
 0x380   :  { %v2012_v25 = vadd.f32 %v2011_v8, %v3523_v57  ;;  %v2013_v19 = vpop.f32.mrb[137].mxu1 }
 0x381   :  { %v2014_v22 = vadd.f32 %v2013_v19, %v3526_v34  ;;  %v2015_v26 = vpop.f32.mrb[138].mxu1  ;;  %2220 = vmatprep.subr.bf16.mxu1 %v2153_v18 }
 0x382   :  { %v2016_v29 = vadd.f32 %v2015_v26, %v3523_v57  ;;  %v2017_v20 = vpop.f32.mrb[139].mxu1  ;;  %2221 = vmatpush1.bf16.xpose.msra.mxu1 %v2152_v17  ;;  %v2110_v54 = vmax.f32 %v2012_v25, 0.0 }
 0x383   :  { %v2018_v23 = vadd.f32 %v2017_v20, %v3526_v34  ;;  %v2111_v35 = vmax.f32 %v2014_v22, 0.0 }
 0x384   :  { %v2112_v14 = vmax.f32 %v2016_v29, 0.0 }
 0x385   :  { %v2113_v36 = vmax.f32 %v2018_v23, 0.0 }
 0x386   :  { %v2154_v38 = vpack.c.bf16 %v2112_v14, %v2110_v54 }
 0x387   :  { %v2155_v27 = vpack.c.bf16 %v2113_v36, %v2111_v35  ;;  %v2021_v39 = vpop.f32.mrb[140].mxu1 }
 0x388   :  { %v2022_v40 = vadd.f32 %v2021_v39, %v3523_v57  ;;  %v2023_v0 = vpop.f32.mrb[141].mxu1 }
 0x389   :  { %v2024_v42 = vadd.f32 %v2023_v0, %v3526_v34  ;;  %v2025_v43 = vpop.f32.mrb[142].mxu1  ;;  %2222 = vmatprep.subr.bf16.mxu1 %v2155_v27 }
 0x38a   :  { %v2026_v9 = vadd.f32 %v2025_v43, %v3523_v57  ;;  %v2027_v6 = vpop.f32.mrb[143].mxu1  ;;  %2223 = vmatpush1.bf16.xpose.msra.mxu1 %v2154_v38  ;;  %v2114_v47 = vmax.f32 %v2022_v40, 0.0 }
 0x38b   :  { %v2028_v49 = vadd.f32 %v2027_v6, %v3526_v34  ;;  %v2115_v53 = vmax.f32 %v2024_v42, 0.0 }
 0x38c   :  { %v2116_v52 = vmax.f32 %v2026_v9, 0.0 }
 0x38d   :  { %v2117_v51 = vmax.f32 %v2028_v49, 0.0 }
 0x38e   :  { %v2156_v55 = vpack.c.bf16 %v2116_v52, %v2114_v47 }
 0x38f   :  { %v2157_v56 = vpack.c.bf16 %v2117_v51, %v2115_v53  ;;  %v2031_v58 = vpop.f32.mrb[144].mxu1 }
 0x390   :  { %v2032_v2 = vadd.f32 %v2031_v58, %v3523_v57  ;;  %v2033_v59 = vpop.f32.mrb[145].mxu1 }
 0x391   :  { %v2034_v44 = vadd.f32 %v2033_v59, %v3526_v34  ;;  %v2035_v24 = vpop.f32.mrb[146].mxu1  ;;  %2224 = vmatprep.subr.bf16.mxu1 %v2157_v56  ;;  %v2171_v56 = vpop.permute.xlu0 %2170 }
 0x392   :  { %v2036_v28 = vadd.f32 %v2035_v24, %v3523_v57  ;;  %v2037_v50 = vpop.f32.mrb[147].mxu1  ;;  %2225 = vmatpush1.bf16.xpose.msra.mxu1 %v2156_v55  ;;  %v2118_v33 = vmax.f32 %v2032_v2, 0.0  ;;  %v2192_v55 = vrot.slane %v3534_v10, %v3540_v31  ;;  %v2176_v58 = vrot.slane %v2171_v56, %v3073_v30 }
 0x393   :  { %v2038_v37 = vadd.f32 %v2037_v50, %v3526_v34  ;;  %v2119_v32 = vmax.f32 %v2034_v44, 0.0 }
 0x394   :  { %v2120_v3 = vmax.f32 %v2036_v28, 0.0 }
 0x395   :  { %v2121_v1 = vmax.f32 %v2038_v37, 0.0 }
 0x396   :  { %v2158_v16 = vpack.c.bf16 %v2120_v3, %v2118_v33 }
 0x397   :  { %v2159_v45 = vpack.c.bf16 %v2121_v1, %v2119_v32  ;;  %v2041_v48 = vpop.f32.mrb[148].mxu1 }
 0x398   :  { %v2042_v46 = vadd.f32 %v2041_v48, %v3523_v57  ;;  %v2043_v63 = vpop.f32.mrb[149].mxu1 }
 0x399   :  { %v2044_v60 = vadd.f32 %v2043_v63, %v3526_v34  ;;  %v2045_v61 = vpop.f32.mrb[150].mxu1  ;;  %2226 = vmatprep.subr.bf16.mxu1 %v2159_v45 }
 0x39a   :  { %v2046_v4 = vadd.f32 %v2045_v61, %v3523_v57  ;;  %v2047_v5 = vpop.f32.mrb[151].mxu1  ;;  %2227 = vmatpush1.bf16.xpose.msra.mxu1 %v2158_v16  ;;  %v2122_v62 = vmax.f32 %v2042_v46, 0.0 }
 0x39b   :  { %v2048_v12 = vadd.f32 %v2047_v5, %v3526_v34  ;;  %v2123_v7 = vmax.f32 %v2044_v60, 0.0 }
 0x39c   :  { %v2124_v13 = vmax.f32 %v2046_v4, 0.0 }
 0x39d   :  { %v2125_v41 = vmax.f32 %v2048_v12, 0.0 }
 0x39e   :  { %v2160_v21 = vpack.c.bf16 %v2124_v13, %v2122_v62 }
 0x39f   :  { %v2161_v15 = vpack.c.bf16 %v2125_v41, %v2123_v7  ;;  %v2051_v17 = vpop.f32.mrb[152].mxu1 }
 0x3a0   :  { %v2052_v18 = vadd.f32 %v2051_v17, %v3523_v57  ;;  %v2053_v8 = vpop.f32.mrb[153].mxu1 }
 0x3a1   :  { %v2054_v25 = vadd.f32 %v2053_v8, %v3526_v34  ;;  %v2055_v19 = vpop.f32.mrb[154].mxu1  ;;  %2228 = vmatprep.subr.bf16.mxu1 %v2161_v15 }
 0x3a2   :  { %v2056_v22 = vadd.f32 %v2055_v19, %v3523_v57  ;;  %v2057_v26 = vpop.f32.mrb[155].mxu1  ;;  %2229 = vmatpush1.bf16.xpose.msra.mxu1 %v2160_v21  ;;  %v2126_v20 = vmax.f32 %v2052_v18, 0.0 }
 0x3a3   :  { %v2058_v29 = vadd.f32 %v2057_v26, %v3526_v34  ;;  %v2127_v54 = vmax.f32 %v2054_v25, 0.0 }
 0x3a4   :  { %v2128_v23 = vmax.f32 %v2056_v22, 0.0 }
 0x3a5   :  { %v2129_v14 = vmax.f32 %v2058_v29, 0.0 }
 0x3a6   :  { %v2162_v35 = vpack.c.bf16 %v2128_v23, %v2126_v20 }
 0x3a7   :  { %v2163_v36 = vpack.c.bf16 %v2129_v14, %v2127_v54  ;;  %v2061_v38 = vpop.f32.mrb[156].mxu1 }
 0x3a8   :  { %v2062_v27 = vadd.f32 %v2061_v38, %v3523_v57  ;;  %v2063_v39 = vpop.f32.mrb[157].mxu1 }
 0x3a9   :  { %v2064_v40 = vadd.f32 %v2063_v39, %v3526_v34  ;;  %v2065_v0 = vpop.f32.mrb[158].mxu1  ;;  %2230 = vmatprep.subr.bf16.mxu1 %v2163_v36 }
 0x3aa   :  { %v2066_v42 = vadd.f32 %v2065_v0, %v3523_v57  ;;  %v2067_v43 = vpop.f32.mrb[159].mxu1  ;;  %2231 = vmatpush1.bf16.xpose.msra.mxu1 %v2162_v35  ;;  %v2130_v6 = vmax.f32 %v2062_v27, 0.0 }
 0x3ab   :  { %v2068_v9 = vadd.f32 %v2067_v43, %v3526_v34  ;;  %v2131_v47 = vmax.f32 %v2064_v40, 0.0 }
 0x3ac   :  { %v2132_v49 = vmax.f32 %v2066_v42, 0.0 }
 0x3ad   :  { %v2133_v52 = vmax.f32 %v2068_v9, 0.0 }
 0x3ae   :  { %v2164_v53 = vpack.c.bf16 %v2132_v49, %v2130_v6 }
 0x3af   :  { %v2165_v51 = vpack.c.bf16 %v2133_v52, %v2131_v47 }
 0x3b1   :  { %2232 = vmatprep.subr.bf16.mxu1 %v2165_v51 }
 0x3b2   :  { %2233 = vmatpush1.bf16.xpose.msra.mxu1 %v2164_v53 }
 0x3b9   :  { %2235 = vmatmul.mubr.bf16.vlgmr.msra.gmra.mrb[160].mxu1 %v2192_v55 }
 0x48c   :  { %v2236_v57 = vpop.f32.mrb[160].mxu1 }
 0x48d   :  { %v2237_v2 = vadd.f32 %v2236_v57, %v2176_v58  ;;  %v2238_v59 = vpop.f32.mrb[161].mxu1 }
 0x48e   :  { %v2239_v44 = vadd.f32 %v2238_v59, %v2176_v58  ;;  %v2240_v34 = vpop.f32.mrb[162].mxu1 }
 0x48f   :  { %v2241_v24 = vpop.f32.mrb[163].mxu1 }
 0x490   :  { %v2245_v28 = vcombine.low %v2237_v2, %v2239_v44 }
 0x492   :  { %v2252_v50 = vrot.slane %v2245_v28, %v3540_v31 }
 0x494   :  { %v2259_v37 = vrot.slane %v2252_v50, %v3540_v31 }
 0x496   :  { %2265 = vst.msk [vmem:[#allocation6] sm:$0x3] %vm2263_vm1, %v2259_v37 }
 0x497   :  { %2746 = shalt.err (!%p2743_p12)
}
 0x498   :  { %s2747_s28 = scalar_lea.hbm %s3630_s9, 32 }
 0x499   :  { %p2748_p13 = scmp.ne.s32.totalorder %s3630_s9, %s2747_s28  ;;  %p2751_p0 = scmp.lt.u32.totalorder %s2747_s28, %s3630_s9 }
 0x49b   :  { %p2753_p1 = pnand %p2751_p0, %p2748_p13 }
 0x49d   :  { %2756 = shalt.err (!%p2753_p1)
}
 0x49e   :  { %2275 = dma.vmem_to_hbm [thread:$0]  %s2273_s24, 32, %s3630_s9, [#allocation5]  }
 0x49f   :  { %2759 = dma.done.wait [#allocation5], 32  }
 0x4a0   :  { %2760 = vsyncadd [#allocation5], 4294967264 }
 0x4a1   :  { %2279 = vsyncpa [#allocation4], 1 }
 0x4a2   :  { %2280 = vsyncpa [#allocation5], 1 }

</bundles_post_ra>
